<compile_context>
chip_gen: v7x
topology: tpu7x:2x2x1
jax: 0.10.0
libtpu: 0.0.40
codegen_flags: <defaults>
</compile_context>

<pallas_src>
import math

import jax
import jax.numpy as jnp
from jax import lax
from jax.experimental import pallas as pl

# ----------------------- small, module-consistent sizes ---------------------
EMB_DIM = 32          # embed_dim
ZDIM = 16             # zdim  (shared q/k dim)
HDIM = 64             # hdim  (value / gate dim)
NDIM = 2              # ndim  (EMA heads per channel)
FFN_DIM = 64          # encoder_ffn_embed_dim
SEQ_LEN = 8           # L
BATCH = 2             # B
BL = BATCH * SEQ_LEN  # fused rows
MAX_POS = 1024
LN_EPS = 1e-5
SCALING = ZDIM ** -0.5          # softmax attention scaling (zdim ** -0.5)
NEG_BIG = -1e30                 # finite "minus infinity" for masking

# mx_proj output layout (padded / reordered to 256 lanes):
#   [ u 0:32 | z 32:48 | r 48:112 | pad 112:128 | hx 128:160 | pad 160:256 ]
MX_PAD = 256
U_END = EMB_DIM                    # 32
Z_END = EMB_DIM + ZDIM             # 48
R_END = EMB_DIM + ZDIM + HDIM      # 112
HX_OFF = 128

# packed parameter slab layout: (SLAB_ROWS, SLAB_W) f32
SLAB_W = 256
SLAB_ROWS = 32
R_LN1W, R_LN1B, R_BV, R_OMEGA, R_BMX = 0, 1, 2, 3, 4
R_QG, R_QB, R_KG, R_KB, R_BH = 5, 6, 7, 8, 9
R_LN2W, R_LN2B, R_B1, R_B2 = 10, 11, 12, 13
R_ABIAS = 16                        # rows 16 .. 16+BL-1 : (BL, BL) attention bias


def _silu(x):
    return x * jax.nn.sigmoid(x)


# ============================ Pallas kernel =================================
def mega_layer_kernel(x_ref, slab_ref, wv_ref, kt_ref, wmx_ref,
                      wh_ref, w1_ref, w2_ref, out_ref):
    D, S, H = EMB_DIM, ZDIM, HDIM

    x = x_ref[...]                                            # (BL, D) residual

    # ---- packed vector params (static, lane-0 slices of one slab) ----------
    ln1w = slab_ref[R_LN1W:R_LN1W + 1, 0:D]
    ln1b = slab_ref[R_LN1B:R_LN1B + 1, 0:D]
    bv = slab_ref[R_BV:R_BV + 1, 0:H]
    omega = slab_ref[R_OMEGA:R_OMEGA + 1, 0:D]
    bmx = slab_ref[R_BMX:R_BMX + 1, 0:MX_PAD]
    qg = slab_ref[R_QG:R_QG + 1, 0:S]
    qb = slab_ref[R_QB:R_QB + 1, 0:S]
    kg = slab_ref[R_KG:R_KG + 1, 0:S]
    kb = slab_ref[R_KB:R_KB + 1, 0:S]
    bh = slab_ref[R_BH:R_BH + 1, 0:D]
    ln2w = slab_ref[R_LN2W:R_LN2W + 1, 0:D]
    ln2b = slab_ref[R_LN2B:R_LN2B + 1, 0:D]
    b1 = slab_ref[R_B1:R_B1 + 1, 0:FFN_DIM]
    b2 = slab_ref[R_B2:R_B2 + 1, 0:D]
    attn_bias = slab_ref[R_ABIAS:R_ABIAS + BL, 0:BL]          # (BL, BL)

    # ---------------- MovingAverageGatedAttention (prenorm) -----------------
    mean = jnp.mean(x, axis=-1, keepdims=True)
    var = jnp.mean(jnp.square(x - mean), axis=-1, keepdims=True)
    xn = (x - mean) * lax.rsqrt(var + LN_EPS) * ln1w + ln1b   # (BL, D)

    # value projection: v = silu(v_proj(x))
    v = _silu(jnp.dot(xn, wv_ref[...], preferred_element_type=jnp.float32)
              + bv)                                           # (BL, H)

    # bidirectional MultiHeadEMA as block-diagonal Toeplitz depthwise conv
    # (source-padding mask already folded into kt in the wrapper):
    #   mx_pre[t, d] = sum_s kt[t, s, d] * xn[s, d]
    mx_pre = jnp.sum(kt_ref[...] * xn[None, :, :], axis=1)    # (BL, D)
    mx = _silu(mx_pre + xn * omega)                           # (BL, D)

    # mx_proj -> [u | z | r | hx]  (padded/reordered, lane-aligned slices)
    base = jnp.dot(mx, wmx_ref[...], preferred_element_type=jnp.float32) \
        + bmx                                                 # (BL, 256)
    u = jax.nn.sigmoid(base[:, 0:U_END])                      # (BL, D)
    z = _silu(base[:, U_END:Z_END])                           # (BL, S)
    r = _silu(base[:, Z_END:R_END])                           # (BL, H)
    hx = base[:, HX_OFF:HX_OFF + D]                           # (BL, D)

    q = z * qg + qb                                           # (BL, S)
    k = z * kg + kb                                           # (BL, S)

    # softmax attention; attn_bias carries rel-pos bias, key-padding mask and
    # the cross-batch -1e30 block mask, so one (BL, BL) softmax suffices.
    qk = lax.dot_general(q * SCALING, k, (((1,), (1,)), ((), ())),
                         preferred_element_type=jnp.float32) + attn_bias
    m = jnp.max(qk, axis=-1, keepdims=True)
    p = jnp.exp(qk - m)
    attn = p * pl.reciprocal(jnp.sum(p, axis=-1, keepdims=True), approx=True)

    h = jnp.dot(attn, v, preferred_element_type=jnp.float32)  # (BL, H)
    h = _silu(hx
              + jnp.dot(h * r, wh_ref[...], preferred_element_type=jnp.float32)
              + bh)                                           # (BL, D)
    out_mega = x + u * (h - x)                                # addcmul

    # ------------------ NormalizedFeedForwardNetwork (prenorm) --------------
    mean2 = jnp.mean(out_mega, axis=-1, keepdims=True)
    var2 = jnp.mean(jnp.square(out_mega - mean2), axis=-1, keepdims=True)
    yn = (out_mega - mean2) * lax.rsqrt(var2 + LN_EPS) * ln2w + ln2b
    y = _silu(jnp.dot(yn, w1_ref[...], preferred_element_type=jnp.float32) + b1)
    y = jnp.dot(y, w2_ref[...], preferred_element_type=jnp.float32) + b2

    out_ref[...] = y + out_mega                               # (BL, D)


# ======================= parameter / glue construction ======================
def make_params(key):
    ks = jax.random.split(key, 22)

    def nrm(k, shape, scale=0.1):
        return (scale * jax.random.normal(k, shape)).astype(jnp.float32)

    kd = 2 * EMB_DIM  # bidirectional EMA => kernel_dim = 2 * embed_dim
    p = {
        # MovingAverageGatedAttention
        'ln1_w': 1.0 + nrm(ks[0], (EMB_DIM,), 0.05),
        'ln1_b': nrm(ks[1], (EMB_DIM,), 0.05),
        'wv': nrm(ks[2], (EMB_DIM, HDIM)),                 # v_proj.weight^T
        'bv': nrm(ks[3], (HDIM,), 0.02),
        'ema_delta': nrm(ks[4], (kd, NDIM, 1), 1.0),
        'ema_alpha': nrm(ks[5], (kd, NDIM, 1), 1.0),
        'ema_beta': nrm(ks[6], (kd, NDIM, 1), 1.0),
        'ema_gamma': nrm(ks[7], (kd, NDIM), 1.0),
        'ema_omega': nrm(ks[8], (EMB_DIM,), 1.0),
        'wmx': nrm(ks[9], (EMB_DIM, ZDIM + HDIM + 2 * EMB_DIM)),   # mx_proj.weight^T
        'bmx': nrm(ks[10], (ZDIM + HDIM + 2 * EMB_DIM,), 0.02),
        'qk_gamma': 1.0 + nrm(ks[11], (2, ZDIM), 0.1),
        'qk_beta': nrm(ks[12], (2, ZDIM), 0.1),
        'rel_pos_bias': nrm(ks[13], (2 * MAX_POS - 1,), 0.5),
        'wh': nrm(ks[14], (HDIM, EMB_DIM)),                # h_proj.weight^T
        'bh': nrm(ks[15], (EMB_DIM,), 0.02),
        # NormalizedFeedForwardNetwork
        'ln2_w': 1.0 + nrm(ks[16], (EMB_DIM,), 0.05),
        'ln2_b': nrm(ks[17], (EMB_DIM,), 0.05),
        'w1': nrm(ks[18], (EMB_DIM, FFN_DIM)),
        'b1': nrm(ks[19], (FFN_DIM,), 0.02),
        'w2': nrm(ks[20], (FFN_DIM, EMB_DIM)),
        'b2': nrm(ks[21], (EMB_DIM,), 0.02),
    }
    return p


def ema_toeplitz_kernel(p, L):
    """Bidirectional MultiHeadEMA kernel as a (L_t, L_s, D) Toeplitz tensor.

    Mathematically identical to the reference FFT convolution:
      out[t, d] = sum_{s<=t} k1[d, t-s] x[s, d] + sum_{s>=t} k2[d, s-t] x[s, d]
    """
    scale = math.sqrt(1.0 / NDIM)
    pp = jax.nn.sigmoid(p['ema_delta'])                    # (2D, N, 1)
    alpha = jax.nn.sigmoid(p['ema_alpha'])
    q = 1.0 - pp * alpha                                   # (2D, N, 1)
    vander = jnp.arange(L, dtype=jnp.float32)[None, None, :] * jnp.log(q)
    kern = (pp * p['ema_beta']) * jnp.exp(vander)          # (2D, N, L)
    k_dl = jnp.einsum('dnl,dn->dl', kern, p['ema_gamma'] * scale)   # (2D, L)
    k1, k2 = k_dl[:EMB_DIM], k_dl[EMB_DIM:]                # (D, L) each
    idx = jnp.arange(L)
    rel = idx[:, None] - idx[None, :]                      # t - s
    g1 = jnp.take(k1, jnp.clip(rel, 0, L - 1), axis=1)     # (D, L, L)
    g2 = jnp.take(k2, jnp.clip(-rel, 0, L - 1), axis=1)    # (D, L, L)
    K = jnp.where(rel >= 0, g1, 0.0) + jnp.where(rel <= 0, g2, 0.0)
    return jnp.transpose(K, (1, 2, 0)).astype(jnp.float32)  # (L_t, L_s, D)


def simple_rel_pos_bias(p, L):
    idx = jnp.arange(L)
    return p['rel_pos_bias'][MAX_POS - 1 + idx[None, :] - idx[:, None]]  # (L, L)


# ============================== wrapper ======================================
@jax.jit
def mega_encoder_layer(x_lbd, encoder_padding_mask, params):
    """x_lbd: (L, B, D) float32; encoder_padding_mask: (B, L), 1.0 = pad."""
    L, B, D = x_lbd.shape
    assert (L, B, D) == (SEQ_LEN, BATCH, EMB_DIM)

    x_flat = jnp.transpose(x_lbd, (1, 0, 2)).reshape(B * L, D).astype(jnp.float32)

    mask = encoder_padding_mask.astype(jnp.float32)              # (B, L), 1 = pad
    all_pad = jnp.all(mask > 0.5, axis=-1, keepdims=True)        # (B, 1)
    key_mask = jnp.where(all_pad, 0.0, mask)                     # (B, L)
    notpad = 1.0 - mask                                          # (B, L)

    # block-diagonal Toeplitz EMA tensor with source-padding folded in
    kt = ema_toeplitz_kernel(params, L)                          # (L, L, D)
    kt_big = jnp.zeros((B * L, B * L, D), jnp.float32)
    for b in range(B):
        blk = kt * notpad[b][None, :, None]
        kt_big = kt_big.at[b * L:(b + 1) * L, b * L:(b + 1) * L, :].set(blk)

    # attention bias: rel-pos bias + key-padding + cross-batch block mask
    rb = simple_rel_pos_bias(params, L)                          # (L, L)
    bias = jnp.full((B * L, B * L), NEG_BIG, jnp.float32)
    for b in range(B):
        blk = rb + NEG_BIG * key_mask[b][None, :]
        bias = bias.at[b * L:(b + 1) * L, b * L:(b + 1) * L].set(blk)

    # mx_proj weight / bias: pad + reorder columns so slices are lane-aligned
    wmx = params['wmx']
    wmx_p = jnp.zeros((EMB_DIM, MX_PAD), jnp.float32)
    wmx_p = wmx_p.at[:, 0:R_END].set(wmx[:, 0:R_END])
    wmx_p = wmx_p.at[:, HX_OFF:HX_OFF + EMB_DIM].set(wmx[:, R_END:R_END + EMB_DIM])
    bmx = params['bmx']
    bmx_p = jnp.zeros((MX_PAD,), jnp.float32)
    bmx_p = bmx_p.at[0:R_END].set(bmx[0:R_END])
    bmx_p = bmx_p.at[HX_OFF:HX_OFF + EMB_DIM].set(bmx[R_END:R_END + EMB_DIM])

    # pack all small vector params + attention bias into one slab (single DMA)
    slab = jnp.zeros((SLAB_ROWS, SLAB_W), jnp.float32)

    def put(sl, row, vec):
        vec = vec.reshape(-1)
        return sl.at[row, :vec.shape[0]].set(vec)

    slab = put(slab, R_LN1W, params['ln1_w'])
    slab = put(slab, R_LN1B, params['ln1_b'])
    slab = put(slab, R_BV, params['bv'])
    slab = put(slab, R_OMEGA, params['ema_omega'])
    slab = put(slab, R_BMX, bmx_p)
    slab = put(slab, R_QG, params['qk_gamma'][0])
    slab = put(slab, R_QB, params['qk_beta'][0])
    slab = put(slab, R_KG, params['qk_gamma'][1])
    slab = put(slab, R_KB, params['qk_beta'][1])
    slab = put(slab, R_BH, params['bh'])
    slab = put(slab, R_LN2W, params['ln2_w'])
    slab = put(slab, R_LN2B, params['ln2_b'])
    slab = put(slab, R_B1, params['b1'])
    slab = put(slab, R_B2, params['b2'])
    slab = slab.at[R_ABIAS:R_ABIAS + B * L, 0:B * L].set(bias)

    # single fused invocation (no grid): all operands are whole-array VMEM blocks
    out_flat = pl.pallas_call(
        mega_layer_kernel,
        out_shape=jax.ShapeDtypeStruct((B * L, D), jnp.float32),
    )(x_flat, slab, params['wv'], kt_big, wmx_p,
      params['wh'], params['w1'], params['w2'])

    return jnp.transpose(out_flat.reshape(B, L, D), (1, 0, 2))   # (L, B, D)


# ========================= pure-JAX reference ================================
def mega_encoder_layer_ref(x_lbd, encoder_padding_mask, params):
    L, B, D = x_lbd.shape
    x = x_lbd.astype(jnp.float32)
    mask = encoder_padding_mask.astype(jnp.float32)

    def ln(t, w, b):
        mu = jnp.mean(t, axis=-1, keepdims=True)
        var = jnp.mean(jnp.square(t - mu), axis=-1, keepdims=True)
        return (t - mu) / jnp.sqrt(var + LN_EPS) * w + b

    residual = x
    xn = ln(x, params['ln1_w'], params['ln1_b'])
    v = _silu(xn @ params['wv'] + params['bv'])                     # (L, B, H)

    kt = ema_toeplitz_kernel(params, L)
    xm = xn * (1.0 - mask.T[:, :, None])
    conv = jnp.einsum('tsd,sbd->tbd', kt, xm)
    mx = _silu(conv + xn * params['ema_omega'])

    base = mx @ params['wmx'] + params['bmx']
    u = jax.nn.sigmoid(base[..., :D])
    zr = _silu(base[..., D:D + ZDIM + HDIM])
    hx = base[..., D + ZDIM + HDIM:]
    z, r = zr[..., :ZDIM], zr[..., ZDIM:]
    q = z * params['qk_gamma'][0] + params['qk_beta'][0]
    k = z * params['qk_gamma'][1] + params['qk_beta'][1]

    rb = simple_rel_pos_bias(params, L)
    qk = jnp.einsum('lbs,mbs->blm', q * SCALING, k) + rb            # (B, L, L)
    all_pad = jnp.all(mask > 0.5, axis=-1, keepdims=True)
    key_mask = jnp.where(all_pad, jnp.zeros_like(mask), mask)
    qk = jnp.where(key_mask[:, None, :] > 0.5, -jnp.inf, qk)
    attn = jax.nn.softmax(qk, axis=-1)

    h = jnp.einsum('blm,mbh->lbh', attn, v)
    h = _silu(hx + (h * r) @ params['wh'] + params['bh'])
    out = residual + u * (h - residual)

    res2 = out
    yn = ln(out, params['ln2_w'], params['ln2_b'])
    y = _silu(yn @ params['w1'] + params['b1'])
    y = y @ params['w2'] + params['b2']
    return y + res2


# ================================ main =======================================
if __name__ == "__main__":
    key = jax.random.PRNGKey(0)
    kx, kp = jax.random.split(key)
    params = make_params(kp)

    x = jax.random.normal(kx, (SEQ_LEN, BATCH, EMB_DIM), dtype=jnp.float32)
    # padding mask (B, L): 1 marks padding; pad last two steps of batch elem 1
    padding_mask = jnp.zeros((BATCH, SEQ_LEN), dtype=jnp.float32)
    padding_mask = padding_mask.at[1, SEQ_LEN - 2:].set(1.0)

    out = mega_encoder_layer(x, padding_mask, params)
    out = jax.block_until_ready(out)

    with jax.default_matmul_precision('highest'):
        ref = mega_encoder_layer_ref(x, padding_mask, params)
    ref = jax.block_until_ready(ref)

    assert out.shape == (SEQ_LEN, BATCH, EMB_DIM)
    assert bool(jnp.all(jnp.isfinite(out)))
    max_err = float(jnp.max(jnp.abs(out - ref)))
    assert max_err < 5e-2, f"kernel vs reference mismatch: {max_err}"

    print("KERNEL_OK")
</pallas_src>

<mosaic_0001>
module attributes {stable_mosaic.version = 11 : i64} {
  func.func @mega_layer_kernel(%arg0: memref<16x32xf32, #tpu.memory_space<vmem>>, %arg1: memref<32x256xf32, #tpu.memory_space<vmem>>, %arg2: memref<32x64xf32, #tpu.memory_space<vmem>>, %arg3: memref<16x16x32xf32, #tpu.memory_space<vmem>>, %arg4: memref<32x256xf32, #tpu.memory_space<vmem>>, %arg5: memref<64x32xf32, #tpu.memory_space<vmem>>, %arg6: memref<32x64xf32, #tpu.memory_space<vmem>>, %arg7: memref<64x32xf32, #tpu.memory_space<vmem>>, %arg8: memref<16x32xf32, #tpu.memory_space<vmem>>) attributes {dimension_semantics = [], scalar_prefetch = 0 : i64, scratch_operands = 0 : i64, tpu.core_type = #tpu.core_type<tc>} {
    %c0 = arith.constant 0 : index
    %c0_0 = arith.constant 0 : index
    %0 = vector.load %arg0[%c0, %c0_0] : memref<16x32xf32, #tpu.memory_space<vmem>>, vector<16x32xf32>
    %c0_1 = arith.constant 0 : index
    %c0_2 = arith.constant 0 : index
    %1 = vector.load %arg1[%c0_1, %c0_2] : memref<32x256xf32, #tpu.memory_space<vmem>>, vector<1x32xf32>
    %c1 = arith.constant 1 : index
    %c0_3 = arith.constant 0 : index
    %2 = vector.load %arg1[%c1, %c0_3] : memref<32x256xf32, #tpu.memory_space<vmem>>, vector<1x32xf32>
    %c2 = arith.constant 2 : index
    %c0_4 = arith.constant 0 : index
    %3 = vector.load %arg1[%c2, %c0_4] : memref<32x256xf32, #tpu.memory_space<vmem>>, vector<1x64xf32>
    %c3 = arith.constant 3 : index
    %c0_5 = arith.constant 0 : index
    %4 = vector.load %arg1[%c3, %c0_5] : memref<32x256xf32, #tpu.memory_space<vmem>>, vector<1x32xf32>
    %c4 = arith.constant 4 : index
    %c0_6 = arith.constant 0 : index
    %5 = vector.load %arg1[%c4, %c0_6] : memref<32x256xf32, #tpu.memory_space<vmem>>, vector<1x256xf32>
    %c5 = arith.constant 5 : index
    %c0_7 = arith.constant 0 : index
    %6 = vector.load %arg1[%c5, %c0_7] : memref<32x256xf32, #tpu.memory_space<vmem>>, vector<1x16xf32>
    %c6 = arith.constant 6 : index
    %c0_8 = arith.constant 0 : index
    %7 = vector.load %arg1[%c6, %c0_8] : memref<32x256xf32, #tpu.memory_space<vmem>>, vector<1x16xf32>
    %c7 = arith.constant 7 : index
    %c0_9 = arith.constant 0 : index
    %8 = vector.load %arg1[%c7, %c0_9] : memref<32x256xf32, #tpu.memory_space<vmem>>, vector<1x16xf32>
    %c8 = arith.constant 8 : index
    %c0_10 = arith.constant 0 : index
    %9 = vector.load %arg1[%c8, %c0_10] : memref<32x256xf32, #tpu.memory_space<vmem>>, vector<1x16xf32>
    %c9 = arith.constant 9 : index
    %c0_11 = arith.constant 0 : index
    %10 = vector.load %arg1[%c9, %c0_11] : memref<32x256xf32, #tpu.memory_space<vmem>>, vector<1x32xf32>
    %c10 = arith.constant 10 : index
    %c0_12 = arith.constant 0 : index
    %11 = vector.load %arg1[%c10, %c0_12] : memref<32x256xf32, #tpu.memory_space<vmem>>, vector<1x32xf32>
    %c11 = arith.constant 11 : index
    %c0_13 = arith.constant 0 : index
    %12 = vector.load %arg1[%c11, %c0_13] : memref<32x256xf32, #tpu.memory_space<vmem>>, vector<1x32xf32>
    %c12 = arith.constant 12 : index
    %c0_14 = arith.constant 0 : index
    %13 = vector.load %arg1[%c12, %c0_14] : memref<32x256xf32, #tpu.memory_space<vmem>>, vector<1x64xf32>
    %c13 = arith.constant 13 : index
    %c0_15 = arith.constant 0 : index
    %14 = vector.load %arg1[%c13, %c0_15] : memref<32x256xf32, #tpu.memory_space<vmem>>, vector<1x32xf32>
    %c16 = arith.constant 16 : index
    %c0_16 = arith.constant 0 : index
    %15 = vector.load %arg1[%c16, %c0_16] : memref<32x256xf32, #tpu.memory_space<vmem>>, vector<16x16xf32>
    %cst = arith.constant dense<0.000000e+00> : vector<16xf32>
    %16 = vector.multi_reduction <add>, %0, %cst [1] : vector<16x32xf32> to vector<16xf32>
    %17 = vector.shape_cast %16 : vector<16xf32> to vector<16x1xf32>
    %cst_17 = arith.constant 3.200000e+01 : f32
    %18 = vector.broadcast %cst_17 : f32 to vector<16x1xf32>
    %19 = arith.divf %17, %18 : vector<16x1xf32>
    %20 = vector.broadcast %19 : vector<16x1xf32> to vector<16x32xf32>
    %21 = arith.subf %0, %20 : vector<16x32xf32>
    %22 = arith.mulf %21, %21 : vector<16x32xf32>
    %cst_18 = arith.constant dense<0.000000e+00> : vector<16xf32>
    %23 = vector.multi_reduction <add>, %22, %cst_18 [1] : vector<16x32xf32> to vector<16xf32>
    %24 = vector.shape_cast %23 : vector<16xf32> to vector<16x1xf32>
    %cst_19 = arith.constant 3.200000e+01 : f32
    %25 = vector.broadcast %cst_19 : f32 to vector<16x1xf32>
    %26 = arith.divf %24, %25 : vector<16x1xf32>
    %27 = vector.broadcast %19 : vector<16x1xf32> to vector<16x32xf32>
    %28 = arith.subf %0, %27 : vector<16x32xf32>
    %cst_20 = arith.constant 9.99999974E-6 : f32
    %29 = vector.broadcast %cst_20 : f32 to vector<16x1xf32>
    %30 = arith.addf %26, %29 : vector<16x1xf32>
    %31 = math.rsqrt %30 : vector<16x1xf32>
    %32 = vector.broadcast %31 : vector<16x1xf32> to vector<16x32xf32>
    %33 = arith.mulf %28, %32 : vector<16x32xf32>
    %34 = vector.broadcast %1 : vector<1x32xf32> to vector<16x32xf32>
    %35 = arith.mulf %33, %34 : vector<16x32xf32>
    %36 = vector.broadcast %2 : vector<1x32xf32> to vector<16x32xf32>
    %37 = arith.addf %35, %36 : vector<16x32xf32>
    %c0_21 = arith.constant 0 : index
    %c0_22 = arith.constant 0 : index
    %38 = vector.load %arg2[%c0_21, %c0_22] : memref<32x64xf32, #tpu.memory_space<vmem>>, vector<32x64xf32>
    %cst_23 = arith.constant dense<0.000000e+00> : vector<16x64xf32>
    %39 = tpu.matmul %37, %38, %cst_23 {dimension_numbers = #tpu.dot_dimension_numbers<[1], [0], [0], [1], [0, 0, 1, 1], [], []>} : vector<16x32xf32>, vector<32x64xf32>, vector<16x64xf32> -> vector<16x64xf32>
    %40 = vector.broadcast %3 : vector<1x64xf32> to vector<16x64xf32>
    %41 = arith.addf %39, %40 : vector<16x64xf32>
    %42 = arith.negf %41 : vector<16x64xf32>
    %43 = math.exp %42 : vector<16x64xf32>
    %cst_24 = arith.constant 1.000000e+00 : f32
    %44 = vector.broadcast %cst_24 : f32 to vector<16x64xf32>
    %45 = arith.addf %44, %43 : vector<16x64xf32>
    %46 = arith.divf %44, %45 : vector<16x64xf32>
    %47 = arith.mulf %41, %46 : vector<16x64xf32>
    %c0_25 = arith.constant 0 : index
    %c0_26 = arith.constant 0 : index
    %c0_27 = arith.constant 0 : index
    %48 = vector.load %arg3[%c0_25, %c0_26, %c0_27] : memref<16x16x32xf32, #tpu.memory_space<vmem>>, vector<16x16x32xf32>
    %49 = vector.shape_cast %37 : vector<16x32xf32> to vector<1x16x32xf32>
    %50 = vector.broadcast %49 : vector<1x16x32xf32> to vector<16x16x32xf32>
    %51 = arith.mulf %48, %50 : vector<16x16x32xf32>
    %cst_28 = arith.constant dense<0.000000e+00> : vector<16x32xf32>
    %52 = vector.multi_reduction <add>, %51, %cst_28 [1] : vector<16x16x32xf32> to vector<16x32xf32>
    %53 = vector.broadcast %4 : vector<1x32xf32> to vector<16x32xf32>
    %54 = arith.mulf %37, %53 : vector<16x32xf32>
    %55 = arith.addf %52, %54 : vector<16x32xf32>
    %56 = arith.negf %55 : vector<16x32xf32>
    %57 = math.exp %56 : vector<16x32xf32>
    %cst_29 = arith.constant 1.000000e+00 : f32
    %58 = vector.broadcast %cst_29 : f32 to vector<16x32xf32>
    %59 = arith.addf %58, %57 : vector<16x32xf32>
    %60 = arith.divf %58, %59 : vector<16x32xf32>
    %61 = arith.mulf %55, %60 : vector<16x32xf32>
    %c0_30 = arith.constant 0 : index
    %c0_31 = arith.constant 0 : index
    %62 = vector.load %arg4[%c0_30, %c0_31] : memref<32x256xf32, #tpu.memory_space<vmem>>, vector<32x256xf32>
    %cst_32 = arith.constant dense<0.000000e+00> : vector<16x256xf32>
    %63 = tpu.matmul %61, %62, %cst_32 {dimension_numbers = #tpu.dot_dimension_numbers<[1], [0], [0], [1], [0, 0, 1, 1], [], []>} : vector<16x32xf32>, vector<32x256xf32>, vector<16x256xf32> -> vector<16x256xf32>
    %64 = vector.broadcast %5 : vector<1x256xf32> to vector<16x256xf32>
    %65 = arith.addf %63, %64 : vector<16x256xf32>
    %66 = vector.extract_strided_slice %65 {offsets = [0, 0], sizes = [16, 32], strides = [1, 1]} : vector<16x256xf32> to vector<16x32xf32>
    %67 = arith.negf %66 : vector<16x32xf32>
    %68 = math.exp %67 : vector<16x32xf32>
    %cst_33 = arith.constant 1.000000e+00 : f32
    %69 = vector.broadcast %cst_33 : f32 to vector<16x32xf32>
    %70 = arith.addf %69, %68 : vector<16x32xf32>
    %71 = arith.divf %69, %70 : vector<16x32xf32>
    %72 = vector.extract_strided_slice %65 {offsets = [0, 32], sizes = [16, 16], strides = [1, 1]} : vector<16x256xf32> to vector<16x16xf32>
    %73 = arith.negf %72 : vector<16x16xf32>
    %74 = math.exp %73 : vector<16x16xf32>
    %cst_34 = arith.constant 1.000000e+00 : f32
    %75 = vector.broadcast %cst_34 : f32 to vector<16x16xf32>
    %76 = arith.addf %75, %74 : vector<16x16xf32>
    %77 = arith.divf %75, %76 : vector<16x16xf32>
    %78 = arith.mulf %72, %77 : vector<16x16xf32>
    %79 = vector.extract_strided_slice %65 {offsets = [0, 48], sizes = [16, 64], strides = [1, 1]} : vector<16x256xf32> to vector<16x64xf32>
    %80 = arith.negf %79 : vector<16x64xf32>
    %81 = math.exp %80 : vector<16x64xf32>
    %cst_35 = arith.constant 1.000000e+00 : f32
    %82 = vector.broadcast %cst_35 : f32 to vector<16x64xf32>
    %83 = arith.addf %82, %81 : vector<16x64xf32>
    %84 = arith.divf %82, %83 : vector<16x64xf32>
    %85 = arith.mulf %79, %84 : vector<16x64xf32>
    %86 = vector.extract_strided_slice %65 {offsets = [0, 128], sizes = [16, 32], strides = [1, 1]} : vector<16x256xf32> to vector<16x32xf32>
    %87 = vector.broadcast %6 : vector<1x16xf32> to vector<16x16xf32>
    %88 = arith.mulf %78, %87 : vector<16x16xf32>
    %89 = vector.broadcast %7 : vector<1x16xf32> to vector<16x16xf32>
    %90 = arith.addf %88, %89 : vector<16x16xf32>
    %91 = vector.broadcast %8 : vector<1x16xf32> to vector<16x16xf32>
    %92 = arith.mulf %78, %91 : vector<16x16xf32>
    %93 = vector.broadcast %9 : vector<1x16xf32> to vector<16x16xf32>
    %94 = arith.addf %92, %93 : vector<16x16xf32>
    %cst_36 = arith.constant 2.500000e-01 : f32
    %95 = vector.broadcast %cst_36 : f32 to vector<16x16xf32>
    %96 = arith.mulf %90, %95 : vector<16x16xf32>
    %cst_37 = arith.constant dense<0.000000e+00> : vector<16x16xf32>
    %97 = tpu.matmul %96, %94, %cst_37 {dimension_numbers = #tpu.dot_dimension_numbers<[1], [1], [0], [0], [0, 0, 1, 0], [], []>} : vector<16x16xf32>, vector<16x16xf32>, vector<16x16xf32> -> vector<16x16xf32>
    %98 = arith.addf %97, %15 : vector<16x16xf32>
    %cst_38 = arith.constant dense<0xFF800000> : vector<16xf32>
    %99 = vector.multi_reduction <maximumf>, %98, %cst_38 [1] : vector<16x16xf32> to vector<16xf32>
    %100 = vector.shape_cast %99 : vector<16xf32> to vector<16x1xf32>
    %101 = vector.broadcast %100 : vector<16x1xf32> to vector<16x16xf32>
    %102 = arith.subf %98, %101 : vector<16x16xf32>
    %103 = math.exp %102 : vector<16x16xf32>
    %cst_39 = arith.constant dense<0.000000e+00> : vector<16xf32>
    %104 = vector.multi_reduction <add>, %103, %cst_39 [1] : vector<16x16xf32> to vector<16xf32>
    %105 = vector.shape_cast %104 : vector<16xf32> to vector<16x1xf32>
    %106 = tpu.reciprocal %105 {approx = true} : vector<16x1xf32> -> vector<16x1xf32>
    %107 = vector.broadcast %106 : vector<16x1xf32> to vector<16x16xf32>
    %108 = arith.mulf %103, %107 : vector<16x16xf32>
    %cst_40 = arith.constant dense<0.000000e+00> : vector<16x64xf32>
    %109 = tpu.matmul %108, %47, %cst_40 {dimension_numbers = #tpu.dot_dimension_numbers<[1], [0], [0], [1], [0, 0, 1, 1], [], []>} : vector<16x16xf32>, vector<16x64xf32>, vector<16x64xf32> -> vector<16x64xf32>
    %110 = arith.mulf %109, %85 : vector<16x64xf32>
    %c0_41 = arith.constant 0 : index
    %c0_42 = arith.constant 0 : index
    %111 = vector.load %arg5[%c0_41, %c0_42] : memref<64x32xf32, #tpu.memory_space<vmem>>, vector<64x32xf32>
    %cst_43 = arith.constant dense<0.000000e+00> : vector<16x32xf32>
    %112 = tpu.matmul %110, %111, %cst_43 {dimension_numbers = #tpu.dot_dimension_numbers<[1], [0], [0], [1], [0, 0, 1, 1], [], []>} : vector<16x64xf32>, vector<64x32xf32>, vector<16x32xf32> -> vector<16x32xf32>
    %113 = arith.addf %86, %112 : vector<16x32xf32>
    %114 = vector.broadcast %10 : vector<1x32xf32> to vector<16x32xf32>
    %115 = arith.addf %113, %114 : vector<16x32xf32>
    %116 = arith.negf %115 : vector<16x32xf32>
    %117 = math.exp %116 : vector<16x32xf32>
    %cst_44 = arith.constant 1.000000e+00 : f32
    %118 = vector.broadcast %cst_44 : f32 to vector<16x32xf32>
    %119 = arith.addf %118, %117 : vector<16x32xf32>
    %120 = arith.divf %118, %119 : vector<16x32xf32>
    %121 = arith.mulf %115, %120 : vector<16x32xf32>
    %122 = arith.subf %121, %0 : vector<16x32xf32>
    %123 = arith.mulf %71, %122 : vector<16x32xf32>
    %124 = arith.addf %0, %123 : vector<16x32xf32>
    %cst_45 = arith.constant dense<0.000000e+00> : vector<16xf32>
    %125 = vector.multi_reduction <add>, %124, %cst_45 [1] : vector<16x32xf32> to vector<16xf32>
    %126 = vector.shape_cast %125 : vector<16xf32> to vector<16x1xf32>
    %cst_46 = arith.constant 3.200000e+01 : f32
    %127 = vector.broadcast %cst_46 : f32 to vector<16x1xf32>
    %128 = arith.divf %126, %127 : vector<16x1xf32>
    %129 = vector.broadcast %128 : vector<16x1xf32> to vector<16x32xf32>
    %130 = arith.subf %124, %129 : vector<16x32xf32>
    %131 = arith.mulf %130, %130 : vector<16x32xf32>
    %cst_47 = arith.constant dense<0.000000e+00> : vector<16xf32>
    %132 = vector.multi_reduction <add>, %131, %cst_47 [1] : vector<16x32xf32> to vector<16xf32>
    %133 = vector.shape_cast %132 : vector<16xf32> to vector<16x1xf32>
    %cst_48 = arith.constant 3.200000e+01 : f32
    %134 = vector.broadcast %cst_48 : f32 to vector<16x1xf32>
    %135 = arith.divf %133, %134 : vector<16x1xf32>
    %136 = vector.broadcast %128 : vector<16x1xf32> to vector<16x32xf32>
    %137 = arith.subf %124, %136 : vector<16x32xf32>
    %cst_49 = arith.constant 9.99999974E-6 : f32
    %138 = vector.broadcast %cst_49 : f32 to vector<16x1xf32>
    %139 = arith.addf %135, %138 : vector<16x1xf32>
    %140 = math.rsqrt %139 : vector<16x1xf32>
    %141 = vector.broadcast %140 : vector<16x1xf32> to vector<16x32xf32>
    %142 = arith.mulf %137, %141 : vector<16x32xf32>
    %143 = vector.broadcast %11 : vector<1x32xf32> to vector<16x32xf32>
    %144 = arith.mulf %142, %143 : vector<16x32xf32>
    %145 = vector.broadcast %12 : vector<1x32xf32> to vector<16x32xf32>
    %146 = arith.addf %144, %145 : vector<16x32xf32>
    %c0_50 = arith.constant 0 : index
    %c0_51 = arith.constant 0 : index
    %147 = vector.load %arg6[%c0_50, %c0_51] : memref<32x64xf32, #tpu.memory_space<vmem>>, vector<32x64xf32>
    %cst_52 = arith.constant dense<0.000000e+00> : vector<16x64xf32>
    %148 = tpu.matmul %146, %147, %cst_52 {dimension_numbers = #tpu.dot_dimension_numbers<[1], [0], [0], [1], [0, 0, 1, 1], [], []>} : vector<16x32xf32>, vector<32x64xf32>, vector<16x64xf32> -> vector<16x64xf32>
    %149 = vector.broadcast %13 : vector<1x64xf32> to vector<16x64xf32>
    %150 = arith.addf %148, %149 : vector<16x64xf32>
    %151 = arith.negf %150 : vector<16x64xf32>
    %152 = math.exp %151 : vector<16x64xf32>
    %cst_53 = arith.constant 1.000000e+00 : f32
    %153 = vector.broadcast %cst_53 : f32 to vector<16x64xf32>
    %154 = arith.addf %153, %152 : vector<16x64xf32>
    %155 = arith.divf %153, %154 : vector<16x64xf32>
    %156 = arith.mulf %150, %155 : vector<16x64xf32>
    %c0_54 = arith.constant 0 : index
    %c0_55 = arith.constant 0 : index
    %157 = vector.load %arg7[%c0_54, %c0_55] : memref<64x32xf32, #tpu.memory_space<vmem>>, vector<64x32xf32>
    %cst_56 = arith.constant dense<0.000000e+00> : vector<16x32xf32>
    %158 = tpu.matmul %156, %157, %cst_56 {dimension_numbers = #tpu.dot_dimension_numbers<[1], [0], [0], [1], [0, 0, 1, 1], [], []>} : vector<16x64xf32>, vector<64x32xf32>, vector<16x32xf32> -> vector<16x32xf32>
    %159 = vector.broadcast %14 : vector<1x32xf32> to vector<16x32xf32>
    %160 = arith.addf %158, %159 : vector<16x32xf32>
    %161 = arith.addf %160, %124 : vector<16x32xf32>
    %c0_57 = arith.constant 0 : index
    %c0_58 = arith.constant 0 : index
    %162 = vector.load %arg8[%c0_57, %c0_58] : memref<16x32xf32, #tpu.memory_space<vmem>>, vector<16x32xf32>
    tpu.vector_store %arg8[%c0_57, %c0_58], %161 {strides = array<i32>} : memref<16x32xf32, #tpu.memory_space<vmem>>, vector<16x32xf32>,
    return
  }
}

</mosaic_0001>

<bundles_post_ra>
// kernel: mega_encoder_layer.1
= control target key start
LH: loop header
LB: loop body
LE: loop exit
PB: predicated region body
PF: predicated region fallthrough
CT: control target
= control target key end

     0   :  { %vm48_vm0 = vcmask 261120   ;;  %v1633_v23 = vmov 0.0   ;;  %s1634_s12 = smov 32   ;;  %vm585_vm1 = vcmask 1041409   ;;  %vm588_vm2 = vcmask 1042434   ;;  %s1635_s19 = smov 96   ;;  %s2142_s0 = inlined_call_operand.vmem [shape: f32[16,32], index: 0, kind: input, shape index: {}]   ;;  %s2143_s2 = inlined_call_operand.vmem [shape: f32[32,64], index: 2, kind: input, shape index: {}]   ;;  %s2144_s4 = inlined_call_operand.vmem [shape: f32[32,256], index: 4, kind: input, shape index: {}]   ;;  %s2145_s1 = inlined_call_operand.vmem [shape: f32[32,256], index: 1, kind: input, shape index: {}]   ;;  %s2146_s3 = inlined_call_operand.vmem [shape: f32[16,16,32], index: 3, kind: input, shape index: {}]   ;;  %s2147_s5 = inlined_call_operand.vmem [shape: f32[64,32], index: 5, kind: input, shape index: {}]   ;;  %s2148_s6 = inlined_call_operand.vmem [shape: f32[32,64], index: 6, kind: input, shape index: {}]   ;;  %s2149_s7 = inlined_call_operand.vmem [shape: f32[64,32], index: 7, kind: input, shape index: {}]   ;;  %s2150_s8 = inlined_call_operand.vmem [shape: f32[16,32], index: 8, kind: output, shape index: {}]  }
   0x1   :  { %v29_v0 = vld [vmem:[%s2142_s0] sm:$0xff]  ;;  %v30_v1 = vld [vmem:[%s2142_s0 + $0x8] sm:$0xff]  ;;  %v82_v17 = vld [vmem:[%s2143_s2 + $0x10] sm:$0xff]  ;;  %687 = vmatprep.mubr.f32.mxu1 %v1633_v23  ;;  %vm591_vm3 = vcmask 1043459   ;;  %vm594_vm4 = vcmask 1044484   ;;  %vm597_vm5 = vcmask 1045509  }
   0x2   :  { %v49_v2 = vsel %vm48_vm0, %v29_v0, 0.0  ;;  %v52_v3 = vsel %vm48_vm0, %v30_v1, 0.0  ;;  %v80_v14 = vld [vmem:[%s2143_s2] sm:$0xff]  ;;  %v81_v15 = vld [vmem:[%s2143_s2 + $0x8] sm:$0xff]  ;;  %v83_v18 = vld [vmem:[%s2143_s2 + $0x18] sm:$0xff]  ;;  %vm600_vm6 = vcmask 1046534  }
   0x3   :  { %50 = vadd.xlane.f32.xlu0 %v49_v2  ;;  %v1444_v16 = vpack.c.bf16 %v81_v15, %v80_v14  ;;  %v1448_v19 = vpack.c.bf16 %v83_v18, %v82_v17  ;;  %v550_v20 = vld [vmem:[%s2144_s4 + $0x8] sm:$0xff]  ;;  %v552_v21 = vld [vmem:[%s2144_s4 + $0x18] sm:$0xff]  ;;  %v549_v22 = vld [vmem:[%s2144_s4] sm:$0xff]  ;;  %vm603_vm7 = vcmask 1047559   ;;  %vm752_vm8 = vcmask 130048   ;;  %s1636_s23 = smov 80  }
   0x4   :  { %v1452_v24 = vpack.c.bf16 %v552_v21, %v550_v20  ;;  %v551_v25 = vld [vmem:[%s2144_s4 + $0x10] sm:$0xff]  ;;  %v554_v26 = vld [vmem:[%s2144_s4 + $0x28] sm:$0xff]  ;;  %v556_v27 = vld [vmem:[%s2144_s4 + $0x38] sm:$0xff]  ;;  %vm957_vm10 = vcmask 523264  }
   0x5   :  { %1445 = vmatprep.subr.bf16.mxu0 %v1444_v16  ;;  %v1454_v28 = vpack.c.bf16 %v551_v25, %v549_v22  ;;  %v1456_v29 = vpack.c.bf16 %v556_v27, %v554_v26  ;;  %v553_v30 = vld [vmem:[%s2144_s4 + $0x20] sm:$0xff]  ;;  %v555_v31 = vld [vmem:[%s2144_s4 + $0x30] sm:$0xff]  ;;  %v180_v60 = vld [vmem:[%s2146_s3 + $0x8] sm:$0xff] }
   0x6   :  { %1447 = vmatpush3.bf16.msra.mxu0 %v1444_v16  ;;  %1453 = vmatprep.subr.bf16.mxu1 %v1452_v24  ;;  %v1458_v32 = vpack.c.bf16 %v555_v31, %v553_v30  ;;  %v40_v33 = vld [vmem:[%s2145_s1 + $0x10] ss:$0 sm:$0xff]  ;;  %v39_v34 = vld [vmem:[%s2145_s1 + $0x7] ss:$0 sm:$0xff]  ;;  %v37_v36 = vld [vmem:[%s2145_s1 + $0x5] ss:$0 sm:$0xff] }
   0x7   :  { %53 = vadd.xlane.f32.xlu0 %v52_v3  ;;  %1449 = vmatprep.subr.bf16.mxu0 %v1448_v19  ;;  %v38_v40 = vld [vmem:[%s2145_s1 + $0x6] ss:$0 sm:$0xff]  ;;  %v31_v44 = vld [vmem:[%s2145_s1] ss:$0 sm:$0xff]  ;;  %v32_v46 = vld [vmem:[%s2145_s1 + $0x1] ss:$0 sm:$0xff] }
   0x8   :  { %1455 = vmatpush1.bf16.msra.mxu1 %v1454_v28  ;;  %v179_v48 = vld [vmem:[%s2146_s3] sm:$0xff]  ;;  %v181_v50 = vld [vmem:[%s2146_s3 + $0x10] sm:$0xff]  ;;  %v182_v61 = vld [vmem:[%s2146_s3 + $0x18] sm:$0xff] }
   0x9   :  { %1457 = vmatprep.subr.bf16.mxu1 %v1456_v29  ;;  %v183_v51 = vld [vmem:[%s2146_s3 + $0x20] sm:$0xff]  ;;  %v185_v52 = vld [vmem:[%s2146_s3 + $0x30] sm:$0xff]  ;;  %v186_v2 = vld [vmem:[%s2146_s3 + $0x38] sm:$0xff] }
   0xa   :  { %1451 = vmatpush3.bf16.msra.mxu0 %v1448_v19  ;;  %v187_v55 = vld [vmem:[%s2146_s3 + $0x40] sm:$0xff]  ;;  %v189_v56 = vld [vmem:[%s2146_s3 + $0x50] sm:$0xff]  ;;  %v188_v3 = vld [vmem:[%s2146_s3 + $0x48] sm:$0xff] }
   0xb   :  { %v191_v57 = vld [vmem:[%s2146_s3 + $0x60] sm:$0xff]  ;;  %v193_v58 = vld [vmem:[%s2146_s3 + $0x70] sm:$0xff]  ;;  %vm1461_vm9 = vmpackc.low %vm752_vm8, %vm752_vm8 }
   0xc   :  { %1459 = vmatpush1.bf16.msra.mxu1 %v1458_v32 }
  0x1d   :  { %727 = vrot.lane.b32.xlu0 %v39_v34, %s1634_s12 }
  0x90   :  { %v51_v4 = vpop.xlane.xlu0 %50 }
  0x91   :  { %v56_v5 = vmul.f32 0.03125, %v51_v4 }
  0x93   :  { %v58_v6 = vsub.f32 %v29_v0, %v56_v5 }
  0x94   :  { %v54_v7 = vpop.xlane.xlu0 %53 }
  0x95   :  { %v57_v8 = vmul.f32 0.03125, %v54_v7  ;;  %v60_v9 = vmul.f32 %v58_v6, %v58_v6 }
  0x97   :  { %v1690_v10 = vsub.f32 %v30_v1, %v57_v8  ;;  %v62_v11 = vsel %vm48_vm0, %v60_v9, 0.0  ;;  %v184_v1 = vld [vmem:[%s2146_s3 + $0x28] sm:$0xff]  ;;  %v190_v9 = vld [vmem:[%s2146_s3 + $0x58] sm:$0xff] }
  0x98   :  { %63 = vadd.xlane.f32.xlu1 %v62_v11  ;;  %v194_v11 = vld [vmem:[%s2146_s3 + $0x78] sm:$0xff] }
  0x99   :  { %v61_v12 = vmul.f32 %v1690_v10, %v1690_v10 }
  0x9b   :  { %v65_v13 = vsel %vm48_vm0, %v61_v12, 0.0 }
  0x9c   :  { %66 = vadd.xlane.f32.xlu1 %v65_v13 }
  0xad   :  { %733 = vrot.lane.b32.xlu1 %v40_v33, %s1634_s12 }
  0xb1   :  { %715 = vrot.lane.b32.xlu1 %v37_v36, %s1634_s12 }
  0xb5   :  { %721 = vrot.lane.b32.xlu1 %v38_v40, %s1634_s12 }
 0x125   :  { %v64_v35 = vpop.xlane.xlu1 %63 }
 0x126   :  { %v68_v37 = vmul.f32 0.03125, %v64_v35 }
 0x128   :  { %v70_v38 = vadd.f32 1e-05, %v68_v37 }
 0x129   :  { %v67_v39 = vpop.xlane.xlu1 %66 }
 0x12a   :  { %1519 = vrsqrt.f32 %v70_v38  ;;  %v69_v41 = vmul.f32 0.03125, %v67_v39 }
 0x12c   :  { %v71_v42 = vadd.f32 1e-05, %v69_v41 }
 0x12e   :  { %1521 = vrsqrt.f32 %v71_v42 }
 0x134   :  { %v1520_v43 = vpop.eup %1519 }
 0x135   :  { %v74_v45 = vmul.f32 %v1520_v43, %v58_v6 }
 0x137   :  { %v76_v47 = vmul.f32 %v74_v45, %v31_v44 }
 0x138   :  { %v1522_v49 = vpop.eup %1521 }
 0x139   :  { %v1763_v53 = vadd.f32 %v76_v47, %v32_v46  ;;  %v75_v54 = vmul.f32 %v1522_v49, %v1690_v10  ;;  %v192_v10 = vld [vmem:[%s2146_s3 + $0x68] sm:$0xff] }
 0x13b   :  { %v77_v59 = vmul.f32 %v75_v54, %v31_v44  ;;  %1378 = vmatprep.mubr.msk.f32.mxu0 %vm48_vm0, %v1763_v53  ;;  %v211_v62 = vmul.f32 %v179_v48, %v1763_v53  ;;  %v213_v63 = vmul.f32 %v181_v50, %v1763_v53  ;;  %v215_v0 = vmul.f32 %v183_v51, %v1763_v53 }
 0x13c   :  { %v217_v4 = vmul.f32 %v185_v52, %v1763_v53  ;;  %v219_v5 = vmul.f32 %v187_v55, %v1763_v53  ;;  %v221_v6 = vmul.f32 %v189_v56, %v1763_v53  ;;  %v223_v7 = vmul.f32 %v191_v57, %v1763_v53 }
 0x13d   :  { %v1802_v8 = vadd.f32 %v77_v59, %v32_v46  ;;  %v225_v12 = vmul.f32 %v193_v58, %v1763_v53  ;;  %v243_v13 = vsel %vm48_vm0, %v211_v62, 0.0  ;;  %v252_v14 = vsel %vm48_vm0, %v213_v63, 0.0 }
 0x13e   :  { %v261_v15 = vsel %vm48_vm0, %v215_v0, 0.0  ;;  %v270_v16 = vsel %vm48_vm0, %v217_v4, 0.0  ;;  %v279_v17 = vsel %vm48_vm0, %v219_v5, 0.0  ;;  %v288_v18 = vsel %vm48_vm0, %v221_v6, 0.0 }
 0x13f   :  { %1379 = vmatmul.mubr.msk.f32.vlgmr.msra.gmra.mrb[0].mxu0 %vm48_vm0, %v1802_v8  ;;  %v212_v19 = vmul.f32 %v180_v60, %v1802_v8  ;;  %v214_v20 = vmul.f32 %v182_v61, %v1802_v8  ;;  %v216_v21 = vmul.f32 %v184_v1, %v1802_v8  ;;  %v218_v22 = vmul.f32 %v186_v2, %v1802_v8 }
 0x140   :  { %v220_v24 = vmul.f32 %v188_v3, %v1802_v8  ;;  %v222_v25 = vmul.f32 %v190_v9, %v1802_v8  ;;  %v224_v26 = vmul.f32 %v192_v10, %v1802_v8  ;;  %v226_v27 = vmul.f32 %v194_v11, %v1802_v8 }
 0x141   :  { %v244_v28 = vsel %vm48_vm0, %v212_v19, 0.0  ;;  %v253_v29 = vsel %vm48_vm0, %v214_v20, 0.0  ;;  %v262_v30 = vsel %vm48_vm0, %v216_v21, 0.0  ;;  %v271_v31 = vsel %vm48_vm0, %v218_v22, 0.0 }
 0x142   :  { %v245_v32 = vadd.f32 %v244_v28, %v243_v13  ;;  %v254_v33 = vadd.f32 %v253_v29, %v252_v14  ;;  %v263_v34 = vadd.f32 %v262_v30, %v261_v15  ;;  %v272_v35 = vadd.f32 %v271_v31, %v270_v16  ;;  %v1843_v14 = vld [vmem:[%s2145_s1 + $0x3] ss:$0 sm:$0xff] }
 0x143   :  { %v280_v36 = vsel %vm48_vm0, %v220_v24, 0.0  ;;  %v289_v37 = vsel %vm48_vm0, %v222_v25, 0.0  ;;  %v297_v38 = vsel %vm48_vm0, %v223_v7, 0.0  ;;  %v298_v39 = vsel %vm48_vm0, %v224_v26, 0.0 }
 0x144   :  { %v246_v40 = vrot.slane %v245_v32, 4  ;;  %v255_v41 = vrot.slane %v254_v33, 4  ;;  %v264_v42 = vrot.slane %v263_v34, 4  ;;  %v273_v43 = vrot.slane %v272_v35, 4 }
 0x145   :  { %v281_v44 = vadd.f32 %v280_v36, %v279_v17  ;;  %v290_v45 = vadd.f32 %v289_v37, %v288_v18  ;;  %v299_v46 = vadd.f32 %v298_v39, %v297_v38  ;;  %v306_v47 = vsel %vm48_vm0, %v225_v12, 0.0 }
 0x146   :  { %v247_v48 = vadd.f32 %v246_v40, %v245_v32  ;;  %v256_v49 = vadd.f32 %v255_v41, %v254_v33  ;;  %v265_v50 = vadd.f32 %v264_v42, %v263_v34  ;;  %v274_v51 = vadd.f32 %v273_v43, %v272_v35  ;;  %v195_v41 = vld [vmem:[%s2146_s3 + $0x80] sm:$0xff] }
 0x147   :  { %v282_v52 = vrot.slane %v281_v44, 4  ;;  %v291_v54 = vrot.slane %v290_v45, 4  ;;  %v300_v55 = vrot.slane %v299_v46, 4  ;;  %v307_v56 = vsel %vm48_vm0, %v226_v27, 0.0 }
 0x148   :  { %v248_v57 = vrot.slane %v247_v48, 2  ;;  %v257_v58 = vrot.slane %v256_v49, 2  ;;  %v266_v59 = vrot.slane %v265_v50, 2  ;;  %v275_v60 = vrot.slane %v274_v51, 2 }
 0x149   :  { %v283_v61 = vadd.f32 %v282_v52, %v281_v44  ;;  %v292_v62 = vadd.f32 %v291_v54, %v290_v45  ;;  %v301_v63 = vadd.f32 %v300_v55, %v299_v46  ;;  %v308_v0 = vadd.f32 %v307_v56, %v306_v47  ;;  %v196_v46 = vld [vmem:[%s2146_s3 + $0x88] sm:$0xff]  ;;  %v197_v47 = vld [vmem:[%s2146_s3 + $0x90] sm:$0xff]  ;;  %v198_v52 = vld [vmem:[%s2146_s3 + $0x98] sm:$0xff] }
 0x14a   :  { %v249_v1 = vadd.f32 %v248_v57, %v247_v48  ;;  %v258_v2 = vadd.f32 %v257_v58, %v256_v49  ;;  %v267_v3 = vadd.f32 %v266_v59, %v265_v50  ;;  %v276_v4 = vadd.f32 %v275_v60, %v274_v51  ;;  %v199_v54 = vld [vmem:[%s2146_s3 + $0xa0] sm:$0xff]  ;;  %v200_v55 = vld [vmem:[%s2146_s3 + $0xa8] sm:$0xff] }
 0x14b   :  { %v284_v5 = vrot.slane %v283_v61, 2  ;;  %v293_v6 = vrot.slane %v292_v62, 2  ;;  %v302_v7 = vrot.slane %v301_v63, 2  ;;  %v309_v9 = vrot.slane %v308_v0, 4 }
 0x14c   :  { %v250_v10 = vrot.slane %v249_v1, 1  ;;  %v259_v11 = vrot.slane %v258_v2, 1  ;;  %v268_v12 = vrot.slane %v267_v3, 1  ;;  %v277_v13 = vrot.slane %v276_v4, 1 }
 0x14d   :  { %v285_v15 = vadd.f32 %v284_v5, %v283_v61  ;;  %v294_v16 = vadd.f32 %v293_v6, %v292_v62  ;;  %v303_v17 = vadd.f32 %v302_v7, %v301_v63  ;;  %v310_v18 = vadd.f32 %v309_v9, %v308_v0  ;;  %v201_v62 = vld [vmem:[%s2146_s3 + $0xb0] sm:$0xff]  ;;  %v202_v63 = vld [vmem:[%s2146_s3 + $0xb8] sm:$0xff]  ;;  %v203_v0 = vld [vmem:[%s2146_s3 + $0xc0] sm:$0xff] }
 0x14e   :  { %v251_v19 = vadd.f32 %v250_v10, %v249_v1  ;;  %v260_v25 = vadd.f32 %v259_v11, %v258_v2  ;;  %v269_v26 = vadd.f32 %v268_v12, %v267_v3  ;;  %v278_v27 = vadd.f32 %v277_v13, %v276_v4  ;;  %v204_v5 = vld [vmem:[%s2146_s3 + $0xc8] sm:$0xff]  ;;  %v205_v6 = vld [vmem:[%s2146_s3 + $0xd0] sm:$0xff]  ;;  %v206_v10 = vld [vmem:[%s2146_s3 + $0xd8] sm:$0xff] }
 0x14f   :  { %v286_v20 = vrot.slane %v285_v15, 1  ;;  %v295_v21 = vrot.slane %v294_v16, 1  ;;  %v304_v22 = vrot.slane %v303_v17, 1  ;;  %v311_v24 = vrot.slane %v310_v18, 2  ;;  %v207_v11 = vld [vmem:[%s2146_s3 + $0xe0] sm:$0xff] }
 0x150   :  { %v387_v28 = vmul.f32 %v1763_v53, %v1843_v14  ;;  %v227_v59 = vmul.f32 %v195_v41, %v1763_v53  ;;  %v228_v1 = vmul.f32 %v196_v46, %v1802_v8  ;;  %v229_v2 = vmul.f32 %v197_v47, %v1763_v53 }
 0x151   :  { %v287_v29 = vadd.f32 %v286_v20, %v285_v15  ;;  %v296_v30 = vadd.f32 %v295_v21, %v294_v16  ;;  %v305_v31 = vadd.f32 %v304_v22, %v303_v17  ;;  %v312_v32 = vadd.f32 %v311_v24, %v310_v18 }
 0x152   :  { %v391_v33 = vrot.slane %v387_v28, 1  ;;  %v392_v34 = vrot.slane %v387_v28, 2  ;;  %v393_v35 = vrot.slane %v387_v28, 3  ;;  %v394_v36 = vrot.slane %v387_v28, 4 }
 0x153   :  { %v313_v37 = vrot.slane %v312_v32, 1  ;;  %v395_v38 = vrot.slane %v387_v28, 5  ;;  %v396_v39 = vrot.slane %v387_v28, 6  ;;  %v397_v40 = vrot.slane %v387_v28, 7 }
 0x154   :  { %v1850_v42 = vadd.f32 %v387_v28, %v251_v19  ;;  %v1852_v43 = vadd.f32 %v391_v33, %v260_v25  ;;  %v1854_v44 = vadd.f32 %v392_v34, %v269_v26  ;;  %v1856_v45 = vadd.f32 %v393_v35, %v278_v27  ;;  %v208_v34 = vld [vmem:[%s2146_s3 + $0xe8] sm:$0xff] }
 0x155   :  { %v314_v48 = vadd.f32 %v313_v37, %v312_v32  ;;  %v1864_v49 = vadd.f32 %v394_v36, %v287_v29  ;;  %v1866_v50 = vadd.f32 %v395_v38, %v296_v30  ;;  %v1868_v51 = vadd.f32 %v396_v39, %v305_v31 }
 0x156   :  { %v1294_v56 = vmul.f32 -1.442695, %v1850_v42  ;;  %v1295_v57 = vmul.f32 -1.442695, %v1852_v43  ;;  %v1296_v58 = vmul.f32 -1.442695, %v1854_v44  ;;  %v230_v7 = vmul.f32 %v198_v52, %v1802_v8 }
 0x157   :  { %v1883_v60 = vadd.f32 %v397_v40, %v314_v48  ;;  %v1297_v61 = vmul.f32 -1.442695, %v1856_v45  ;;  %v1298_v3 = vmul.f32 -1.442695, %v1864_v49  ;;  %v1299_v4 = vmul.f32 -1.442695, %v1866_v50 }
 0x158   :  { %1523 = vpow2.f32 %v1294_v56  ;;  %v1300_v9 = vmul.f32 -1.442695, %v1868_v51  ;;  %v231_v12 = vmul.f32 %v199_v54, %v1763_v53  ;;  %v232_v13 = vmul.f32 %v200_v55, %v1802_v8 }
 0x159   :  { %1525 = vpow2.f32 %v1295_v57  ;;  %v1301_v15 = vmul.f32 -1.442695, %v1883_v60  ;;  %v233_v16 = vmul.f32 %v201_v62, %v1763_v53  ;;  %v234_v17 = vmul.f32 %v202_v63, %v1802_v8 }
 0x15a   :  { %1527 = vpow2.f32 %v1296_v58  ;;  %v235_v18 = vmul.f32 %v203_v0, %v1763_v53  ;;  %v236_v19 = vmul.f32 %v204_v5, %v1802_v8  ;;  %v237_v20 = vmul.f32 %v205_v6, %v1763_v53 }
 0x15b   :  { %1529 = vpow2.f32 %v1297_v61  ;;  %v238_v21 = vmul.f32 %v206_v10, %v1802_v8  ;;  %v1923_v22 = vmul.f32 %v207_v11, %v1763_v53  ;;  %v315_v24 = vsel %vm48_vm0, %v227_v59, 0.0 }
 0x15c   :  { %1531 = vpow2.f32 %v1298_v3  ;;  %v316_v25 = vsel %vm48_vm0, %v228_v1, 0.0  ;;  %v324_v26 = vsel %vm48_vm0, %v229_v2, 0.0  ;;  %v325_v27 = vsel %vm48_vm0, %v230_v7, 0.0 }
 0x15d   :  { %1533 = vpow2.f32 %v1299_v4  ;;  %v317_v28 = vadd.f32 %v316_v25, %v315_v24  ;;  %v326_v29 = vadd.f32 %v325_v27, %v324_v26  ;;  %v333_v30 = vsel %vm48_vm0, %v231_v12, 0.0 }
 0x15e   :  { %1535 = vpow2.f32 %v1300_v9  ;;  %v334_v31 = vsel %vm48_vm0, %v232_v13, 0.0  ;;  %v342_v32 = vsel %vm48_vm0, %v233_v16, 0.0  ;;  %v343_v33 = vsel %vm48_vm0, %v234_v17, 0.0  ;;  %v210_v16 = vld [vmem:[%s2146_s3 + $0xf8] sm:$0xff] }
 0x15f   :  { %1537 = vpow2.f32 %v1301_v15  ;;  %v318_v35 = vrot.slane %v317_v28, 4  ;;  %v327_v36 = vrot.slane %v326_v29, 4  ;;  %v335_v37 = vadd.f32 %v334_v31, %v333_v30  ;;  %v209_v15 = vld [vmem:[%s2146_s3 + $0xf0] sm:$0xff] }
 0x160   :  { %v344_v38 = vadd.f32 %v343_v33, %v342_v32  ;;  %v351_v39 = vsel %vm48_vm0, %v235_v18, 0.0  ;;  %v352_v40 = vsel %vm48_vm0, %v236_v19, 0.0  ;;  %v360_v41 = vsel %vm48_vm0, %v237_v20, 0.0 }
 0x161   :  { %v361_v46 = vsel %vm48_vm0, %v238_v21, 0.0  ;;  %v319_v48 = vadd.f32 %v318_v35, %v317_v28  ;;  %v328_v52 = vadd.f32 %v327_v36, %v326_v29  ;;  %v336_v54 = vrot.slane %v335_v37, 4 }
 0x162   :  { %v1524_v47 = vpop.eup %1523  ;;  %v345_v55 = vrot.slane %v344_v38, 4  ;;  %v240_v58 = vmul.f32 %v208_v34, %v1802_v8  ;;  %v353_v59 = vadd.f32 %v352_v40, %v351_v39  ;;  %v362_v61 = vadd.f32 %v361_v46, %v360_v41 }
 0x163   :  { %v1526_v56 = vpop.eup %1525  ;;  %v485_v57 = vadd.f32 1.0, %v1524_v47  ;;  %v320_v0 = vrot.slane %v319_v48, 2  ;;  %v329_v1 = vrot.slane %v328_v52, 2  ;;  %v337_v2 = vadd.f32 %v336_v54, %v335_v37 }
 0x164   :  { %v1528_v62 = vpop.eup %1527  ;;  %v486_v63 = vadd.f32 1.0, %v1526_v56  ;;  %v346_v5 = vadd.f32 %v345_v55, %v344_v38  ;;  %v354_v6 = vrot.slane %v353_v59, 4  ;;  %v241_v30 = vmul.f32 %v209_v15, %v1763_v53 }
 0x165   :  { %v1530_v3 = vpop.eup %1529  ;;  %v487_v4 = vadd.f32 1.0, %v1528_v62  ;;  %1539 = vrcp.f32 %v485_v57  ;;  %v321_v10 = vadd.f32 %v320_v0, %v319_v48  ;;  %v330_v11 = vadd.f32 %v329_v1, %v328_v52 }
 0x166   :  { %v1532_v7 = vpop.eup %1531  ;;  %v488_v9 = vadd.f32 1.0, %v1530_v3  ;;  %1541 = vrcp.f32 %v486_v63  ;;  %v338_v17 = vrot.slane %v337_v2, 2  ;;  %v347_v18 = vrot.slane %v346_v5, 2 }
 0x167   :  { %v1534_v12 = vpop.eup %1533  ;;  %v489_v13 = vadd.f32 1.0, %v1532_v7  ;;  %1543 = vrcp.f32 %v487_v4  ;;  %v322_v21 = vrot.slane %v321_v10, 1  ;;  %v331_v24 = vrot.slane %v330_v11, 1 }
 0x168   :  { %v1536_v19 = vpop.eup %1535  ;;  %v490_v20 = vadd.f32 1.0, %v1534_v12  ;;  %1545 = vrcp.f32 %v488_v9  ;;  %v339_v27 = vadd.f32 %v338_v17, %v337_v2  ;;  %v348_v28 = vadd.f32 %v347_v18, %v346_v5 }
 0x169   :  { %v1538_v25 = vpop.eup %1537  ;;  %v491_v26 = vadd.f32 1.0, %v1536_v19  ;;  %1547 = vrcp.f32 %v489_v13  ;;  %v242_v31 = vmul.f32 %v210_v16, %v1802_v8  ;;  %v355_v33 = vadd.f32 %v354_v6, %v353_v59 }
 0x16a   :  { %v492_v29 = vadd.f32 1.0, %v1538_v25  ;;  %1549 = vrcp.f32 %v490_v20  ;;  %v340_v32 = vrot.slane %v339_v27, 1  ;;  %v369_v34 = vsel %vm48_vm0, %v1923_v22, 0.0 }
 0x16b   :  { %1551 = vrcp.f32 %v491_v26  ;;  %v349_v35 = vrot.slane %v348_v28, 1  ;;  %v363_v36 = vrot.slane %v362_v61, 4  ;;  %v370_v37 = vsel %vm48_vm0, %v240_v58, 0.0 }
 0x16c   :  { %1553 = vrcp.f32 %v492_v29  ;;  %v1952_v38 = vadd.f32 %v322_v21, %v321_v10  ;;  %v1954_v39 = vadd.f32 %v331_v24, %v330_v11  ;;  %v356_v53 = vrot.slane %v355_v33, 2 }
 0x16d   :  { %v371_v40 = vadd.f32 %v370_v37, %v369_v34  ;;  %v364_v41 = vadd.f32 %v363_v36, %v362_v61  ;;  %v378_v46 = vsel %vm48_vm0, %v241_v30, 0.0  ;;  %v379_v47 = vsel %vm48_vm0, %v242_v31, 0.0 }
 0x16e   :  { %v1960_v22 = vmul.f32 %v1802_v8, %v1843_v14  ;;  %v341_v52 = vadd.f32 %v340_v32, %v339_v27  ;;  %v357_v54 = vadd.f32 %v356_v53, %v355_v33  ;;  %v380_v56 = vadd.f32 %v379_v47, %v378_v46 }
 0x16f   :  { %v1540_v48 = vpop.eup %1539  ;;  %v372_v55 = vrot.slane %v371_v40, 4  ;;  %v350_v59 = vadd.f32 %v349_v35, %v348_v28  ;;  %v365_v61 = vrot.slane %v364_v41, 2 }
 0x170   :  { %v1542_v57 = vpop.eup %1541  ;;  %v533_v58 = vmul.f32 %v1540_v48, %v1850_v42  ;;  %v398_v62 = vrot.slane %v1960_v22, 1  ;;  %v381_v8 = vrot.slane %v380_v56, 4  ;;  %v399_v14 = vrot.slane %v1960_v22, 2 }
 0x171   :  { %v1544_v63 = vpop.eup %1543  ;;  %v534_v0 = vmul.f32 %v1542_v57, %v1852_v43  ;;  %v373_v1 = vadd.f32 %v372_v55, %v371_v40  ;;  %v358_v4 = vrot.slane %v357_v54, 1  ;;  %v366_v5 = vadd.f32 %v365_v61, %v364_v41 }
 0x172   :  { %v1546_v2 = vpop.eup %1545  ;;  %v535_v3 = vmul.f32 %v1544_v63, %v1854_v44  ;;  %v400_v6 = vrot.slane %v1960_v22, 3  ;;  %v401_v11 = vrot.slane %v1960_v22, 4  ;;  %v382_v16 = vadd.f32 %v381_v8, %v380_v56 }
 0x173   :  { %v1548_v42 = vpop.eup %1547  ;;  %v536_v7 = vmul.f32 %v1546_v2, %v1856_v45  ;;  %v584_v9 = vrot.slane %v534_v0, 7  ;;  %v374_v10 = vrot.slane %v373_v1, 2  ;;  %v367_v15 = vrot.slane %v366_v5, 1 }
 0x174   :  { %v1550_v12 = vpop.eup %1549  ;;  %v537_v43 = vmul.f32 %v1548_v42, %v1864_v49  ;;  %v587_v13 = vrot.slane %v535_v3, 6  ;;  %v359_v26 = vadd.f32 %v358_v4, %v357_v54  ;;  %v383_v32 = vrot.slane %v382_v16, 2 }
 0x175   :  { %v1552_v17 = vpop.eup %1551  ;;  %v538_v44 = vmul.f32 %v1550_v12, %v1866_v50  ;;  %v586_v18 = vsel %vm585_vm1, %v584_v9, %v533_v58  ;;  %v590_v19 = vrot.slane %v536_v7, 5  ;;  %v375_v20 = vadd.f32 %v374_v10, %v373_v1 }
 0x176   :  { %v1554_v21 = vpop.eup %1553  ;;  %v539_v45 = vmul.f32 %v1552_v17, %v1868_v51  ;;  %v589_v24 = vsel %vm588_vm2, %v587_v13, %v586_v18  ;;  %v593_v25 = vrot.slane %v537_v43, 4  ;;  %v368_v31 = vadd.f32 %v367_v15, %v366_v5 }
 0x177   :  { %v540_v27 = vmul.f32 %v1554_v21, %v1883_v60  ;;  %v592_v49 = vsel %vm591_vm3, %v590_v19, %v589_v24  ;;  %v596_v28 = vrot.slane %v538_v44, 3  ;;  %v376_v29 = vrot.slane %v375_v20, 1 }
 0x178   :  { %v595_v30 = vsel %vm594_vm4, %v593_v25, %v592_v49  ;;  %v599_v50 = vrot.slane %v539_v45, 2  ;;  %v402_v51 = vrot.slane %v1960_v22, 5  ;;  %v384_v37 = vadd.f32 %v383_v32, %v382_v16 }
 0x179   :  { %v598_v33 = vsel %vm597_vm5, %v596_v28, %v595_v30  ;;  %v602_v34 = vrot.slane %v540_v27, 1  ;;  %v377_v35 = vadd.f32 %v376_v29, %v375_v20  ;;  %v403_v60 = vrot.slane %v1960_v22, 6 }
 0x17a   :  { %v601_v36 = vsel %vm600_vm6, %v599_v50, %v598_v33  ;;  %v429_v53 = vadd.f32 %v1960_v22, %v1952_v38  ;;  %v430_v41 = vadd.f32 %v398_v62, %v1954_v39  ;;  %v431_v46 = vadd.f32 %v399_v14, %v341_v52 }
 0x17b   :  { %v604_v40 = vsel %vm603_vm7, %v602_v34, %v601_v36  ;;  %v432_v47 = vadd.f32 %v400_v6, %v350_v59  ;;  %v385_v48 = vrot.slane %v384_v37, 1  ;;  %v433_v54 = vadd.f32 %v401_v11, %v359_v26 }
 0x17c   :  { %1310 = vmatmul.mubr.msk.f32.vlgmr.msra.gmra.mrb[0].mxu1 %vm48_vm0, %v604_v40  ;;  %v434_v55 = vadd.f32 %v402_v51, %v368_v31  ;;  %v435_v56 = vadd.f32 %v403_v60, %v377_v35  ;;  %v1302_v57 = vmul.f32 -1.442695, %v429_v53  ;;  %v1303_v58 = vmul.f32 -1.442695, %v430_v41 }
 0x17d   :  { %693 = vmatprep.mubr.f32.mxu1 %v1633_v23  ;;  %v1304_v61 = vmul.f32 -1.442695, %v431_v46  ;;  %v386_v63 = vadd.f32 %v385_v48, %v384_v37  ;;  %v404_v38 = vrot.slane %v1960_v22, 7  ;;  %v1305_v0 = vmul.f32 -1.442695, %v432_v47 }
 0x17e   :  { %1555 = vpow2.f32 %v1302_v57  ;;  %v1306_v1 = vmul.f32 -1.442695, %v433_v54  ;;  %v1307_v52 = vmul.f32 -1.442695, %v434_v55  ;;  %v1308_v59 = vmul.f32 -1.442695, %v435_v56 }
 0x17f   :  { %v436_v39 = vadd.f32 %v404_v38, %v386_v63  ;;  %1557 = vpow2.f32 %v1303_v58 }
 0x180   :  { %1559 = vpow2.f32 %v1304_v61 }
 0x181   :  { %1561 = vpow2.f32 %v1305_v0  ;;  %v1309_v62 = vmul.f32 -1.442695, %v436_v39 }
 0x182   :  { %1563 = vpow2.f32 %v1306_v1 }
 0x183   :  { %1565 = vpow2.f32 %v1307_v52 }
 0x184   :  { %1567 = vpow2.f32 %v1308_v59 }
 0x185   :  { %1569 = vpow2.f32 %v1309_v62 }
 0x188   :  { %v1556_v23 = vpop.eup %1555 }
 0x189   :  { %v1558_v8 = vpop.eup %1557  ;;  %v493_v14 = vadd.f32 1.0, %v1556_v23 }
 0x18a   :  { %v1560_v2 = vpop.eup %1559  ;;  %v494_v3 = vadd.f32 1.0, %v1558_v8 }
 0x18b   :  { %v1562_v22 = vpop.eup %1561  ;;  %v495_v4 = vadd.f32 1.0, %v1560_v2  ;;  %1571 = vrcp.f32 %v493_v14 }
 0x18c   :  { %v1564_v5 = vpop.eup %1563  ;;  %v496_v6 = vadd.f32 1.0, %v1562_v22  ;;  %1573 = vrcp.f32 %v494_v3 }
 0x18d   :  { %v1566_v42 = vpop.eup %1565  ;;  %v497_v7 = vadd.f32 1.0, %v1564_v5  ;;  %1575 = vrcp.f32 %v495_v4 }
 0x18e   :  { %v1568_v9 = vpop.eup %1567  ;;  %v498_v10 = vadd.f32 1.0, %v1566_v42  ;;  %1577 = vrcp.f32 %v496_v6 }
 0x18f   :  { %v1570_v11 = vpop.eup %1569  ;;  %v499_v12 = vadd.f32 1.0, %v1568_v9  ;;  %1579 = vrcp.f32 %v497_v7 }
 0x190   :  { %v500_v43 = vadd.f32 1.0, %v1570_v11  ;;  %1581 = vrcp.f32 %v498_v10  ;;  %v734_v10 = vpop.permute.xlu1 %733 }
 0x191   :  { %1583 = vrcp.f32 %v499_v12 }
 0x192   :  { %1585 = vrcp.f32 %v500_v43 }
 0x194   :  { %v716_v11 = vpop.permute.xlu1 %715 }
 0x195   :  { %v1572_v13 = vpop.eup %1571 }
 0x196   :  { %v1574_v15 = vpop.eup %1573  ;;  %v541_v20 = vmul.f32 %v1572_v13, %v429_v53 }
 0x197   :  { %v1576_v16 = vpop.eup %1575  ;;  %v542_v17 = vmul.f32 %v1574_v15, %v430_v41  ;;  %v558_v41 = vlaneseq }
 0x198   :  { %v1578_v44 = vpop.eup %1577  ;;  %v543_v18 = vmul.f32 %v1576_v16, %v431_v46  ;;  %v722_v13 = vpop.permute.xlu1 %721 }
 0x199   :  { %v1580_v19 = vpop.eup %1579  ;;  %v544_v21 = vmul.f32 %v1578_v44, %v432_v47  ;;  %v605_v45 = vrot.slane %v542_v17, 7  ;;  %v559_v46 = vshrl.u32 %v558_v41, 7  ;;  %v1289_v47 = vld [vmem:[%s2145_s1 + $0x4] ss:$8 sm:$0x3] }
 0x19a   :  { %v1582_v24 = vpop.eup %1581  ;;  %v545_v25 = vmul.f32 %v1580_v19, %v433_v54  ;;  %v607_v26 = vrot.slane %v543_v18, 6 }
 0x19b   :  { %v1584_v27 = vpop.eup %1583  ;;  %v546_v49 = vmul.f32 %v1582_v24, %v434_v55  ;;  %v606_v28 = vsel %vm585_vm1, %v605_v45, %v541_v20  ;;  %v609_v29 = vrot.slane %v544_v21, 5  ;;  %v564_v48 = vsub.s32 1, %v559_v46  ;;  %v33_v55 = vld [vmem:[%s2145_s1 + $0x2] ss:$0 sm:$0xff] }
 0x19c   :  { %v1586_v30 = vpop.eup %1585  ;;  %v547_v50 = vmul.f32 %v1584_v27, %v435_v56  ;;  %v608_v31 = vsel %vm588_vm2, %v607_v26, %v606_v28  ;;  %v611_v32 = vrot.slane %v545_v25, 4  ;;  %v560_v2 = vsub.s32 0, %v559_v46  ;;  %v728_v25 = vpop.permute.xlu0 %727 }
 0x19d   :  { %v548_v33 = vmul.f32 %v1586_v30, %v436_v39  ;;  %v610_v34 = vsel %vm591_vm3, %v609_v29, %v608_v31  ;;  %v613_v35 = vrot.slane %v546_v49, 3  ;;  %v565_v54 = vrot.slane %v1289_v47, %v564_v48 }
 0x19e   :  { %v612_v51 = vsel %vm594_vm4, %v611_v32, %v610_v34  ;;  %v615_v36 = vrot.slane %v547_v50, 2  ;;  %v561_v3 = vrot.slane %v1289_v47, %v560_v2 }
 0x19f   :  { %v614_v37 = vsel %vm597_vm5, %v613_v35, %v612_v51  ;;  %v617_v60 = vrot.slane %v548_v33, 1 }
 0x1a0   :  { %v616_v53 = vsel %vm600_vm6, %v615_v36, %v614_v37 }
 0x1a1   :  { %v618_v40 = vsel %vm603_vm7, %v617_v60, %v616_v53  ;;  %v47_v53 = vld [vmem:[%s2145_s1 + $0x30] sm:$0xff] }
 0x1a2   :  { %1311 = vmatmul.mubr.msk.f32.gmra.mrb[2].mxu1 %vm48_vm0, %v618_v40  ;;  %v46_v40 = vld [vmem:[%s2145_s1 + $0x20] sm:$0xff] }
 0x212   :  { %v1380_v56 = vpop.f32.mrb[0].mxu0 }
 0x213   :  { %v162_v57 = vadd.f32 %v1380_v56, %v33_v55  ;;  %v156_v58 = vpop.f32.mrb[1].mxu0 }
 0x214   :  { %v157_v61 = vadd.f32 %v156_v58, %v33_v55 }
 0x215   :  { %v1293_v63 = vmul.f32 -1.442695, %v162_v57 }
 0x216   :  { %v1292_v38 = vmul.f32 -1.442695, %v157_v61 }
 0x217   :  { %1587 = vpow2.f32 %v1293_v63 }
 0x218   :  { %1589 = vpow2.f32 %v1292_v38 }
 0x221   :  { %v1588_v0 = vpop.eup %1587 }
 0x222   :  { %v1590_v1 = vpop.eup %1589  ;;  %v172_v39 = vadd.f32 1.0, %v1588_v0 }
 0x223   :  { %v171_v52 = vadd.f32 1.0, %v1590_v1 }
 0x224   :  { %1591 = vrcp.f32 %v172_v39 }
 0x225   :  { %1593 = vrcp.f32 %v171_v52 }
 0x22e   :  { %v1592_v59 = vpop.eup %1591 }
 0x22f   :  { %v1594_v62 = vpop.eup %1593  ;;  %v178_v23 = vmul.f32 %v1592_v59, %v162_v57  ;;  %v949_v59 = vld [vmem:[%s2147_s5] sm:$0xff] }
 0x230   :  { %v177_v8 = vmul.f32 %v1594_v62, %v157_v61  ;;  %v950_v62 = vld [vmem:[%s2147_s5 + $0x8] sm:$0xff] }
 0x232   :  { %v1466_v14 = vpack.c.bf16 %v178_v23, %v177_v8  ;;  %v1470_v23 = vpack.c.bf16 %v950_v62, %v949_v59  ;;  %v1096_v62 = vld [vmem:[%s2148_s6 + $0x18] sm:$0xff] }
 0x24f   :  { %v689_v22 = vpop.f32.mrb[0].mxu1 }
 0x250   :  { %v690_v4 = vadd.f32 %v689_v22, %v561_v3  ;;  %v691_v5 = vpop.f32.mrb[1].mxu1  ;;  %v951_v22 = vld [vmem:[%s2147_s5 + $0x10] sm:$0xff] }
 0x251   :  { %v2003_v6 = vadd.f32 %v691_v5, %v565_v54 }
 0x252   :  { %v1312_v42 = vmul.f32 -1.442695, %v690_v4 }
 0x254   :  { %1595 = vpow2.f32 %v1312_v42 }
 0x25e   :  { %v1596_v7 = vpop.eup %1595 }
 0x25f   :  { %v706_v9 = vadd.f32 1.0, %v1596_v7 }
 0x261   :  { %1597 = vrcp.f32 %v706_v9  ;;  %v953_v9 = vld [vmem:[%s2147_s5 + $0x20] sm:$0xff] }
 0x26b   :  { %v2005_v12 = vpop.eup %1597 }
 0x26c   :  { %v712_v43 = vmul.f32 %v2005_v12, %v690_v4  ;;  %v952_v4 = vld [vmem:[%s2147_s5 + $0x18] sm:$0xff] }
 0x26d   :  { %v1474_v7 = vpack.c.bf16 %v952_v4, %v951_v22 }
 0x26e   :  { %v718_v15 = vmul.f32 %v716_v11, %v712_v43  ;;  %v730_v49 = vmul.f32 %v728_v25, %v712_v43 }
 0x270   :  { %v724_v16 = vadd.f32 %v722_v13, %v718_v15  ;;  %v736_v30 = vadd.f32 %v734_v10, %v730_v49 }
 0x272   :  { %v738_v17 = vmul.f32 0.25, %v724_v16 }
 0x274   :  { %742 = vrot.lane.b32.xlu1 %v738_v17, %s1635_s19 }
 0x275   :  { %v695_v44 = vpop.f32.mrb[2].mxu1 }
 0x276   :  { %v696_v18 = vadd.f32 %v695_v44, %v561_v3  ;;  %v697_v19 = vpop.f32.mrb[3].mxu1 }
 0x277   :  { %v2008_v20 = vadd.f32 %v697_v19, %v565_v54 }
 0x278   :  { %v1313_v21 = vmul.f32 -1.442695, %v696_v18 }
 0x27a   :  { %1599 = vpow2.f32 %v1313_v21 }
 0x284   :  { %v1600_v45 = vpop.eup %1599 }
 0x285   :  { %v707_v24 = vadd.f32 1.0, %v1600_v45  ;;  %v41_v45 = vld [vmem:[%s2145_s1 + $0x11] ss:$0 sm:$0xff] }
 0x287   :  { %1601 = vrcp.f32 %v707_v24 }
 0x291   :  { %v2010_v26 = vpop.eup %1601 }
 0x292   :  { %v713_v27 = vmul.f32 %v2010_v26, %v696_v18 }
 0x294   :  { %v719_v28 = vmul.f32 %v716_v11, %v713_v27  ;;  %v731_v29 = vmul.f32 %v728_v25, %v713_v27 }
 0x296   :  { %v737_v50 = vadd.f32 %v734_v10, %v731_v29  ;;  %v725_v31 = vadd.f32 %v722_v13, %v719_v28  ;;  %v954_v10 = vld [vmem:[%s2147_s5 + $0x28] sm:$0xff]  ;;  %v956_v13 = vld [vmem:[%s2147_s5 + $0x38] sm:$0xff] }
 0x297   :  { %v1478_v11 = vpack.c.bf16 %v954_v10, %v953_v9 }
 0x298   :  { %v1514_v32 = vpack.i.bf16 %v737_v50, %v736_v30  ;;  %v739_v33 = vmul.f32 0.25, %v725_v31 }
 0x29a   :  { %1515 = vrot.lane.b32.xlu0 %v1514_v32, %s1635_s19 }
 0x29e   :  { %744 = vrot.lane.b32.xlu0 %v739_v33, %s1635_s19 }
 0x2e6   :  { %v743_v34 = vpop.permute.xlu1 %742 }
 0x2e7   :  { %1385 = vmatprep.mubr.msk.f32.mxu0 %vm752_vm8, %v743_v34 }
 0x30c   :  { %v1516_v35 = vpop.permute.xlu0 %1515 }
 0x30d   :  { %v1518_v51 = vunpack.i.h.bf16 %v1516_v35  ;;  %v1517_v36 = vunpack.i.l.bf16 %v1516_v35 }
 0x30f   :  { %v1460_v37 = vpack.c.bf16 %v1518_v51, %v1517_v36 }
 0x310   :  { %v745_v60 = vpop.permute.xlu0 %744 }
 0x311   :  { %1462 = vmatprep.subr.msk.bf16.mxu0 %vm1461_vm9, %v1460_v37 }
 0x312   :  { %1465 = vmatpush3.bf16.xpose.msk.msra.mxu0 %vm1461_vm9, %v1460_v37 }
 0x313   :  { %1467 = vmatprep.subr.bf16.mxu0 %v1466_v14 }
 0x319   :  { %1386 = vmatmul.mubr.msk.f32.vlgmr.msra.gmra.mrb[2].mxu0 %vm752_vm8, %v745_v60  ;;  %v1632_v60 = vld [vmem:[%s2142_s0] sm:$0xff] }
 0x31a   :  { %1469 = vmatpush3.bf16.msra.mxu0 %v1466_v14 }
 0x31b   :  { %1471 = vmatprep.subr.bf16.mxu0 %v1470_v23 }
 0x3ec   :  { %v1387_v41 = vpop.f32.mrb[2].mxu0 }
 0x3ed   :  { %v833_v46 = vadd.f32 %v1387_v41, %v47_v53  ;;  %v827_v47 = vpop.f32.mrb[3].mxu0 }
 0x3ee   :  { %v828_v48 = vadd.f32 %v827_v47, %v46_v40 }
 0x3ef   :  { %v839_v54 = vsel %vm752_vm8, %v833_v46, -inf }
 0x3f0   :  { %840 = vmax.xlane.f32.xlu0 %v839_v54  ;;  %v836_v55 = vsel %vm752_vm8, %v828_v48, -inf }
 0x3f1   :  { %837 = vmax.xlane.f32.xlu1 %v836_v55 }
 0x402   :  { %941 = vrot.lane.b32.xlu1 %v712_v43, %s1636_s23  ;;  %v955_v43 = vld [vmem:[%s2147_s5 + $0x30] sm:$0xff] }
 0x403   :  { %v1482_v15 = vpack.c.bf16 %v956_v13, %v955_v43 }
 0x47d   :  { %v841_v56 = vpop.xlane.xlu0 %840 }
 0x47e   :  { %v843_v57 = vsub.f32 %v833_v46, %v841_v56  ;;  %v838_v58 = vpop.xlane.xlu1 %837 }
 0x47f   :  { %v842_v61 = vsub.f32 %v828_v48, %v838_v58 }
 0x480   :  { %v846_v63 = vmul.f32 1.442695, %v843_v57 }
 0x481   :  { %v844_v38 = vmul.f32 1.442695, %v842_v61 }
 0x482   :  { %v942_v17 = vpop.permute.xlu1 %941 }
 0x483   :  { %1603 = vpow2.f32 %v844_v38 }
 0x484   :  { %1605 = vpow2.f32 %v846_v63 }
 0x48d   :  { %v1604_v0 = vpop.eup %1603 }
 0x48e   :  { %v848_v1 = vsel %vm752_vm8, %v1604_v0, 0.0  ;;  %v1606_v39 = vpop.eup %1605 }
 0x48f   :  { %849 = vadd.xlane.f32.xlu0 %v848_v1  ;;  %v851_v52 = vsel %vm752_vm8, %v1606_v39, 0.0  ;;  %v1093_v1 = vld [vmem:[%s2148_s6] sm:$0xff] }
 0x493   :  { %852 = vadd.xlane.f32.xlu0 %v851_v52  ;;  %v1095_v52 = vld [vmem:[%s2148_s6 + $0x10] sm:$0xff] }
 0x4a9   :  { %943 = vrot.lane.b32.xlu0 %v713_v27, %s1636_s23 }
 0x51c   :  { %v850_v8 = vpop.xlane.xlu0 %849 }
 0x51d   :  { %1607 = vrcp.f32 %v850_v8 }
 0x520   :  { %v853_v14 = vpop.xlane.xlu0 %852 }
 0x521   :  { %1609 = vrcp.f32 %v853_v14 }
 0x524   :  { %v944_v18 = vpop.permute.xlu0 %943 }
 0x527   :  { %v1608_v2 = vpop.eup %1607 }
 0x528   :  { %v856_v3 = vmul.f32 %v1608_v2, %v1604_v0 }
 0x52a   :  { %1392 = vmatprep.mubr.msk.f32.mxu0 %vm752_vm8, %v856_v3 }
 0x52b   :  { %v1610_v5 = vpop.eup %1609 }
 0x52c   :  { %v857_v42 = vmul.f32 %v1610_v5, %v1606_v39  ;;  %v1094_v39 = vld [vmem:[%s2148_s6 + $0x8] sm:$0xff] }
 0x52d   :  { %v1486_v59 = vpack.c.bf16 %v1094_v39, %v1093_v1 }
 0x52e   :  { %1393 = vmatmul.mubr.msk.f32.vlgmr.msra.gmra.mrb[4].mxu0 %vm752_vm8, %v857_v42  ;;  %v42_v42 = vld [vmem:[%s2145_s1 + $0x12] ss:$0 sm:$0xff] }
 0x52f   :  { %1473 = vmatpush3.bf16.msra.mxu0 %v1470_v23  ;;  %v1490_v23 = vpack.c.bf16 %v1096_v62, %v1095_v52  ;;  %1487 = vmatprep.subr.bf16.mxu1 %v1486_v59 }
 0x530   :  { %1475 = vmatprep.subr.bf16.mxu0 %v1474_v7  ;;  %1489 = vmatpush3.bf16.msra.mxu1 %v1486_v59 }
 0x531   :  { %1491 = vmatprep.subr.bf16.mxu1 %v1490_v23 }
 0x533   :  { %1477 = vmatpush3.bf16.msra.mxu0 %v1474_v7 }
 0x534   :  { %1479 = vmatprep.subr.bf16.mxu0 %v1478_v11  ;;  %1493 = vmatpush3.bf16.msra.mxu1 %v1490_v23 }
 0x537   :  { %1481 = vmatpush3.bf16.msra.mxu0 %v1478_v11  ;;  %v43_v11 = vld [vmem:[%s2145_s1 + $0x13] ss:$0 sm:$0xff] }
 0x538   :  { %1483 = vmatprep.subr.bf16.mxu0 %v1482_v15 }
 0x53b   :  { %1485 = vmatpush3.bf16.msra.mxu0 %v1482_v15 }
 0x601   :  { %v1394_v16 = vpop.f32.mrb[4].mxu0 }
 0x602   :  { %v930_v44 = vpop.f32.mrb[5].mxu0  ;;  %v948_v21 = vmul.f32 %v1394_v16, %v944_v18  ;;  %v1194_v18 = vld [vmem:[%s2149_s7 + $0x10] sm:$0xff] }
 0x603   :  { %v947_v19 = vmul.f32 %v942_v17, %v930_v44  ;;  %v1192_v17 = vld [vmem:[%s2149_s7] sm:$0xff]  ;;  %v1193_v44 = vld [vmem:[%s2149_s7 + $0x8] sm:$0xff] }
 0x605   :  { %1411 = vmatprep.mubr.msk.f32.mxu0 %vm957_vm10, %v947_v19  ;;  %v1494_v19 = vpack.c.bf16 %v1193_v44, %v1192_v17 }
 0x606   :  { %1412 = vmatmul.mubr.msk.f32.vlgmr.msra.gmra.mrb[6].mxu0 %vm957_vm10, %v948_v21  ;;  %v1195_v21 = vld [vmem:[%s2149_s7 + $0x18] sm:$0xff] }
 0x607   :  { %1495 = vmatprep.subr.bf16.mxu1 %v1494_v19 }
 0x6d9   :  { %v1413_v24 = vpop.f32.mrb[6].mxu0 }
 0x6da   :  { %v1040_v25 = vadd.f32 %v1413_v24, %v2008_v20  ;;  %v1030_v27 = vpop.f32.mrb[7].mxu0  ;;  %v1196_v24 = vld [vmem:[%s2149_s7 + $0x20] sm:$0xff] }
 0x6db   :  { %v1039_v49 = vadd.f32 %v1030_v27, %v2003_v6  ;;  %v1631_v6 = vld [vmem:[%s2142_s0 + $0x8] sm:$0xff] }
 0x6dc   :  { %v1042_v28 = vadd.f32 %v1040_v25, %v41_v45  ;;  %v1197_v25 = vld [vmem:[%s2149_s7 + $0x28] sm:$0xff] }
 0x6dd   :  { %v1041_v29 = vadd.f32 %v1039_v49, %v41_v45  ;;  %v1498_v45 = vpack.c.bf16 %v1195_v21, %v1194_v18  ;;  %v1502_v27 = vpack.c.bf16 %v1197_v25, %v1196_v24  ;;  %v1198_v49 = vld [vmem:[%s2149_s7 + $0x30] sm:$0xff] }
 0x6de   :  { %v1323_v30 = vmul.f32 -1.442695, %v1042_v28 }
 0x6df   :  { %v1322_v50 = vmul.f32 -1.442695, %v1041_v29 }
 0x6e0   :  { %1611 = vpow2.f32 %v1323_v30  ;;  %v44_v30 = vld [vmem:[%s2145_s1 + $0x14] ss:$0 sm:$0xff] }
 0x6e1   :  { %1613 = vpow2.f32 %v1322_v50 }
 0x6ea   :  { %v1612_v31 = vpop.eup %1611 }
 0x6eb   :  { %v1614_v32 = vpop.eup %1613  ;;  %v1050_v33 = vadd.f32 1.0, %v1612_v31 }
 0x6ec   :  { %v1049_v34 = vadd.f32 1.0, %v1614_v32 }
 0x6ed   :  { %1615 = vrcp.f32 %v1050_v33 }
 0x6ee   :  { %1617 = vrcp.f32 %v1049_v34 }
 0x6f7   :  { %v1616_v35 = vpop.eup %1615 }
 0x6f8   :  { %v1618_v51 = vpop.eup %1617  ;;  %v1056_v36 = vmul.f32 %v1616_v35, %v1042_v28  ;;  %v1199_v28 = vld [vmem:[%s2149_s7 + $0x38] sm:$0xff] }
 0x6f9   :  { %v1055_v37 = vmul.f32 %v1618_v51, %v1041_v29  ;;  %v1506_v29 = vpack.c.bf16 %v1199_v28, %v1198_v49 }
 0x6fa   :  { %v1058_v20 = vsub.f32 %v1056_v36, %v1631_v6 }
 0x6fb   :  { %v1057_v53 = vsub.f32 %v1055_v37, %v1632_v60 }
 0x6fc   :  { %v1060_v40 = vmul.f32 %v2010_v26, %v1058_v20 }
 0x6fd   :  { %v1059_v41 = vmul.f32 %v2005_v12, %v1057_v53 }
 0x6fe   :  { %v2068_v46 = vadd.f32 %v1631_v6, %v1060_v40 }
 0x6ff   :  { %v2070_v47 = vadd.f32 %v1632_v60, %v1059_v41  ;;  %v45_v41 = vld [vmem:[%s2145_s1 + $0x15] ss:$0 sm:$0xff] }
 0x700   :  { %v1066_v48 = vsel %vm48_vm0, %v2068_v46, 0.0 }
 0x701   :  { %1067 = vadd.xlane.f32.xlu0 %v1066_v48  ;;  %v1063_v54 = vsel %vm48_vm0, %v2070_v47, 0.0 }
 0x702   :  { %1064 = vadd.xlane.f32.xlu1 %v1063_v54 }
 0x78e   :  { %v1068_v55 = vpop.xlane.xlu0 %1067 }
 0x78f   :  { %v1070_v56 = vmul.f32 0.03125, %v1068_v55  ;;  %v1065_v57 = vpop.xlane.xlu1 %1064 }
 0x790   :  { %v1069_v58 = vmul.f32 0.03125, %v1065_v57 }
 0x791   :  { %v1072_v26 = vsub.f32 %v2068_v46, %v1070_v56 }
 0x792   :  { %v1071_v12 = vsub.f32 %v2070_v47, %v1069_v58 }
 0x793   :  { %v1074_v61 = vmul.f32 %v1072_v26, %v1072_v26 }
 0x794   :  { %v1073_v63 = vmul.f32 %v1071_v12, %v1071_v12 }
 0x795   :  { %v1078_v38 = vsel %vm48_vm0, %v1074_v61, 0.0 }
 0x796   :  { %1079 = vadd.xlane.f32.xlu0 %v1078_v38  ;;  %v1075_v0 = vsel %vm48_vm0, %v1073_v63, 0.0 }
 0x797   :  { %1076 = vadd.xlane.f32.xlu1 %v1075_v0 }
 0x823   :  { %v1080_v8 = vpop.xlane.xlu0 %1079 }
 0x824   :  { %v1082_v14 = vmul.f32 0.03125, %v1080_v8  ;;  %v1077_v2 = vpop.xlane.xlu1 %1076 }
 0x825   :  { %v1081_v3 = vmul.f32 0.03125, %v1077_v2 }
 0x826   :  { %v1084_v22 = vadd.f32 1e-05, %v1082_v14 }
 0x827   :  { %v1083_v4 = vadd.f32 1e-05, %v1081_v3 }
 0x828   :  { %1619 = vrsqrt.f32 %v1084_v22 }
 0x829   :  { %1621 = vrsqrt.f32 %v1083_v4 }
 0x832   :  { %v1620_v5 = vpop.eup %1619 }
 0x833   :  { %v1622_v7 = vpop.eup %1621  ;;  %v1088_v9 = vmul.f32 %v1620_v5, %v1072_v26 }
 0x834   :  { %v1087_v10 = vmul.f32 %v1622_v7, %v1071_v12 }
 0x835   :  { %v1090_v43 = vmul.f32 %v1088_v9, %v42_v42 }
 0x836   :  { %v1089_v13 = vmul.f32 %v1087_v10, %v42_v42 }
 0x837   :  { %v1092_v16 = vadd.f32 %v1090_v43, %v43_v11 }
 0x838   :  { %v1091_v15 = vadd.f32 %v1089_v13, %v43_v11 }
 0x83a   :  { %1422 = vmatprep.mubr.msk.f32.mxu1 %vm48_vm0, %v1091_v15 }
 0x83b   :  { %1423 = vmatmul.mubr.msk.f32.vlgmr.msra.gmra.mrb[4].mxu1 %vm48_vm0, %v1092_v16 }
 0x83c   :  { %1497 = vmatpush3.bf16.msra.mxu1 %v1494_v19 }
 0x83d   :  { %1499 = vmatprep.subr.bf16.mxu1 %v1498_v45 }
 0x840   :  { %1501 = vmatpush3.bf16.msra.mxu1 %v1498_v45 }
 0x841   :  { %1503 = vmatprep.subr.bf16.mxu1 %v1502_v27 }
 0x844   :  { %1505 = vmatpush3.bf16.msra.mxu1 %v1502_v27 }
 0x845   :  { %1507 = vmatprep.subr.bf16.mxu1 %v1506_v29 }
 0x848   :  { %1509 = vmatpush3.bf16.msra.mxu1 %v1506_v29 }
 0x90e   :  { %v1424_v50 = vpop.f32.mrb[4].mxu1 }
 0x90f   :  { %v1175_v31 = vadd.f32 %v1424_v50, %v44_v30  ;;  %v1169_v32 = vpop.f32.mrb[5].mxu1 }
 0x910   :  { %v1170_v33 = vadd.f32 %v1169_v32, %v44_v30 }
 0x911   :  { %v1327_v34 = vmul.f32 -1.442695, %v1175_v31 }
 0x912   :  { %v1326_v35 = vmul.f32 -1.442695, %v1170_v33 }
 0x913   :  { %1623 = vpow2.f32 %v1327_v34 }
 0x914   :  { %1625 = vpow2.f32 %v1326_v35 }
 0x91d   :  { %v1624_v51 = vpop.eup %1623 }
 0x91e   :  { %v1626_v36 = vpop.eup %1625  ;;  %v1185_v37 = vadd.f32 1.0, %v1624_v51 }
 0x91f   :  { %v1184_v6 = vadd.f32 1.0, %v1626_v36 }
 0x920   :  { %1627 = vrcp.f32 %v1185_v37 }
 0x921   :  { %1629 = vrcp.f32 %v1184_v6 }
 0x92a   :  { %v1628_v20 = vpop.eup %1627 }
 0x92b   :  { %v1630_v60 = vpop.eup %1629  ;;  %v1191_v40 = vmul.f32 %v1628_v20, %v1175_v31 }
 0x92c   :  { %v1190_v53 = vmul.f32 %v1630_v60, %v1170_v33 }
 0x92e   :  { %1441 = vmatprep.mubr.msk.f32.mxu1 %vm957_vm10, %v1190_v53 }
 0x92f   :  { %1442 = vmatmul.mubr.msk.f32.vlgmr.msra.gmra.mrb[6].mxu1 %vm957_vm10, %v1191_v40 }
 0xa02   :  { %v1443_v48 = vpop.f32.mrb[6].mxu1 }
 0xa03   :  { %v1278_v54 = vadd.f32 %v1443_v48, %v45_v41  ;;  %v1272_v55 = vpop.f32.mrb[7].mxu1 }
 0xa04   :  { %v1273_v56 = vadd.f32 %v1272_v55, %v45_v41 }
 0xa05   :  { %v1282_v57 = vadd.f32 %v1278_v54, %v2068_v46 }
 0xa06   :  { %v1281_v58 = vadd.f32 %v1273_v56, %v2070_v47 }
 0xa07   :  { %1284 = vst.msk [vmem:[%s2150_s8 + $0x8] sm:$0xff] %vm48_vm0, %v1282_v57 }
 0xa08   :  { %1283 = vst.msk [vmem:[%s2150_s8] sm:$0xff] %vm48_vm0, %v1281_v58 }

</bundles_post_ra>
